<compile_context>
chip_gen: v7x
topology: tpu7x:2x2x1
jax: 0.10.0
libtpu: 0.0.40
codegen_flags: <defaults>
</compile_context>

<pallas_src>
import functools

import jax
import jax.numpy as jnp
from jax.experimental import pallas as pl
from jax.experimental.pallas import tpu as pltpu


# --------------------------------------------------------------------------
# Fused kernel: per batch tile, depth x (matmul + bias + tanh), then fc head.
# --------------------------------------------------------------------------
def _convnet_kernel(depth, *refs):
    x_ref = refs[0]
    w_refs = refs[1:1 + depth]                        # folded conv matrices
    b_refs = refs[1 + depth:1 + 2 * depth]            # bias rows (1, N_l) f32
    fcw_ref = refs[1 + 2 * depth]
    fcb_ref = refs[2 + 2 * depth]
    out_ref = refs[3 + 2 * depth]
    feats_ref = refs[4 + 2 * depth]

    cdt = w_refs[0].dtype                             # MXU operand dtype (bf16/f32)
    a = x_ref[...].astype(cdt)                        # (TB, Cin*H*W)
    act = None
    for l in range(depth):
        pre = jnp.dot(a, w_refs[l][...],
                      preferred_element_type=jnp.float32)   # one MXU matmul / layer
        act = jnp.tanh(pre + b_refs[l][...])                # f32 bias add + EUP tanh
        a = act.astype(cdt)
    feats_ref[...] = act                              # (TB, 128) lane-dense f32 slab
    out_ref[...] = (jnp.dot(a, fcw_ref[...],
                            preferred_element_type=jnp.float32)
                    + fcb_ref[...])                   # (TB, n_out)


# --------------------------------------------------------------------------
# Wrapper: batch grid, resident weights, lane-dense outputs.
# --------------------------------------------------------------------------
def _batch_tile(batch):
    """Return (padded_batch, tile).  Tile = whole batch when batch <= 8
    (full-dim block), otherwise the largest multiple of 8 (capped at 128)
    dividing the 8-padded batch."""
    if batch <= 8:
        return batch, batch
    padded = -(-batch // 8) * 8
    for tile in (128, 64, 32, 16, 8):
        if padded % tile == 0:
            return padded, tile
    return padded, 8


def convnet_forward(operands, x_nchw):
    """Returns (fc(features), features), matching the torch module."""
    bsz, cin, h, w = x_nchw.shape
    depth = len(operands["w"])
    feat = operands["fc_w"].shape[0]
    n_out = operands["fc_w"].shape[1]

    x2 = x_nchw.reshape(bsz, cin * h * w)             # free reshape (NCHW flatten)
    bp, tb = _batch_tile(bsz)
    if bp != bsz:
        x2 = jnp.pad(x2, ((0, bp - bsz), (0, 0)))

    weights = (*operands["w"], *operands["b"], operands["fc_w"], operands["fc_b"])
    in_specs = [pl.BlockSpec((tb, cin * h * w), lambda i: (i, 0))]
    in_specs += [pl.BlockSpec(a_.shape, lambda i: (0, 0)) for a_ in weights]
    out_specs = (pl.BlockSpec((tb, n_out), lambda i: (i, 0)),
                 pl.BlockSpec((tb, feat), lambda i: (i, 0)))
    out_shape = (jax.ShapeDtypeStruct((bp, n_out), jnp.float32),
                 jax.ShapeDtypeStruct((bp, feat), jnp.float32))

    # Real per-step footprint (x tile + resident weights + output tiles),
    # double-buffered, plus headroom for compiler scratch.  Stays well under
    # the default scoped limits (16/32/32 MiB) and v7x's 64 MiB total VMEM.
    weight_bytes = sum(a_.size * a_.dtype.itemsize for a_ in weights)
    blk_bytes = (tb * cin * h * w * x2.dtype.itemsize
                 + weight_bytes
                 + (tb * n_out + tb * feat) * 4)
    vmem_limit = 2 * int(blk_bytes) + (8 << 20)

    k_dims = [wd.shape[0] for wd in operands["w"]]
    n_dims = [wd.shape[1] for wd in operands["w"]]
    cost = pl.CostEstimate(
        flops=2 * bp * (sum(k * n for k, n in zip(k_dims, n_dims)) + feat * n_out),
        transcendentals=bp * sum(n_dims),
        bytes_accessed=int(x2.size * x2.dtype.itemsize + weight_bytes
                           + (bp * n_out + bp * feat) * 4),
    )

    out, feats = pl.pallas_call(
        functools.partial(_convnet_kernel, depth),
        grid=(bp // tb,),
        in_specs=in_specs,
        out_specs=out_specs,
        out_shape=out_shape,
        compiler_params=pltpu.CompilerParams(
            dimension_semantics=("parallel",),        # megacore: split batch on v7x
            vmem_limit_bytes=int(vmem_limit)),
        cost_estimate=cost,
    )(x2, *weights)

    if bp != bsz:
        out, feats = out[:bsz], feats[:bsz]
    return out, feats


# --------------------------------------------------------------------------
# One-time operand preparation (init-time weight folding, batch-independent)
# --------------------------------------------------------------------------
def build_operands(params, in_hw=32, dtype=jnp.bfloat16):
    """Each conv layer becomes one dense matrix W_l[(ci,ih,iw),(co,oh,ow)]
    (built by pushing an identity basis through lax.conv) so that
    conv(x).flatten() == x.flatten() @ W_l, plus a per-row bias.  The basis
    construction only copies exact weight taps, so W_l is exact; the only
    rounding is the final cast to `dtype`."""
    ws, bs = [], []
    h = in_hw
    for (w, b) in params["conv"]:                     # w: (3, 3, cin, cout) HWIO
        _, _, cin, cout = w.shape
        ho = h // 2
        basis = jnp.eye(cin * h * h, dtype=jnp.float32).reshape(cin * h * h, cin, h, h)
        resp = jax.lax.conv_general_dilated(
            basis, w, window_strides=(2, 2), padding=((1, 1), (1, 1)),
            dimension_numbers=("NCHW", "HWIO", "NCHW"))
        ws.append(resp.reshape(cin * h * h, cout * ho * ho).astype(dtype))
        bs.append(jnp.repeat(b, ho * ho).reshape(1, -1).astype(jnp.float32))
        h = ho
    return {
        "w": tuple(ws),
        "b": tuple(bs),
        "fc_w": params["fc_w"].astype(dtype),         # (feature_size, n_out)
        "fc_b": params["fc_b"].reshape(1, -1).astype(jnp.float32),
    }


# --------------------------------------------------------------------------
# Deterministic synthetic parameters (shapes from the torch __init__)
# --------------------------------------------------------------------------
def init_params(key, in_channels=1, n_outputs=1, n_basefilters=2, depth=3, in_hw=32):
    params = {"conv": []}
    cin, h = in_channels, in_hw
    for i in range(depth):
        cout = n_basefilters * 2 ** i
        key, kw_, kb_ = jax.random.split(key, 3)
        fan_in = 9 * cin
        w = jax.random.normal(kw_, (3, 3, cin, cout), jnp.float32) / jnp.sqrt(fan_in)
        b = jax.random.normal(kb_, (cout,), jnp.float32) * 0.01
        params["conv"].append((w, b))
        cin, h = cout, h // 2
    feature_size = cin * h * h                        # matches the torch dummy pass
    key, kw_, kb_ = jax.random.split(key, 3)
    params["fc_w"] = (jax.random.normal(kw_, (feature_size, n_outputs), jnp.float32)
                      / jnp.sqrt(feature_size))
    params["fc_b"] = jax.random.normal(kb_, (n_outputs,), jnp.float32) * 0.01
    return params, feature_size


# --------------------------------------------------------------------------
# Plain-JAX reference (HIGHEST precision) for the numerical self-check
# --------------------------------------------------------------------------
def _reference_forward(params, x_nchw):
    hp = jax.lax.Precision.HIGHEST
    x = x_nchw
    for (w, b) in params["conv"]:
        x = jax.lax.conv_general_dilated(
            x, w, window_strides=(2, 2), padding=((1, 1), (1, 1)),
            dimension_numbers=("NCHW", "HWIO", "NCHW"), precision=hp)
        x = jnp.tanh(x + b[None, :, None, None])
    feats = x.reshape(x.shape[0], -1)
    out = jnp.dot(feats, params["fc_w"], precision=hp) + params["fc_b"]
    return out, feats


if __name__ == "__main__":
    key = jax.random.PRNGKey(0)
    pkey, xkey = jax.random.split(key)
    params, feature_size = init_params(pkey)
    assert feature_size == 128

    ref_fn = jax.jit(_reference_forward)
    fwd = jax.jit(convnet_forward)

    # bf16 MXU operands (production path) and an f32 set for a tighter check.
    ops_bf16 = build_operands(params, dtype=jnp.bfloat16)
    ops_f32 = build_operands(params, dtype=jnp.float32)

    # Input must be 32x32 spatially (fc size derives from a 32x32 dummy pass).
    batch = 24                                        # -> grid=(3,), batch tile 8
    x = jax.random.normal(xkey, (batch, 1, 32, 32), jnp.float32)

    out, feats = fwd(ops_bf16, x)
    jax.block_until_ready((out, feats))
    assert out.shape == (batch, 1), out.shape
    assert feats.shape == (batch, feature_size), feats.shape

    ref_out, ref_feats = ref_fn(params, x)
    assert float(jnp.max(jnp.abs(feats - ref_feats))) < 5e-2
    assert float(jnp.max(jnp.abs(out - ref_out))) < 5e-2

    # f32 operands: tighter structural check of the conv->matmul folding.
    out32, feats32 = fwd(ops_f32, x)
    jax.block_until_ready((out32, feats32))
    assert float(jnp.max(jnp.abs(feats32 - ref_feats))) < 2e-2
    assert float(jnp.max(jnp.abs(out32 - ref_out))) < 2e-2

    # Same operands work at a different batch size (no per-batch rebuild).
    x_small = jax.random.normal(jax.random.PRNGKey(1), (2, 1, 32, 32), jnp.float32)
    out2, feats2 = fwd(ops_bf16, x_small)
    jax.block_until_ready((out2, feats2))
    ref_out2, ref_feats2 = ref_fn(params, x_small)
    assert out2.shape == (2, 1) and feats2.shape == (2, feature_size)
    assert float(jnp.max(jnp.abs(out2 - ref_out2))) < 5e-2
    assert float(jnp.max(jnp.abs(feats2 - ref_feats2))) < 5e-2

    print("KERNEL_OK")
</pallas_src>

<mosaic_0001>
module attributes {stable_mosaic.version = 11 : i64} {
  func.func @_convnet_kernel(%arg0: i32, %arg1: memref<8x1024xf32, #tpu.memory_space<vmem>>, %arg2: memref<1024x512xbf16, #tpu.memory_space<vmem>>, %arg3: memref<512x256xbf16, #tpu.memory_space<vmem>>, %arg4: memref<256x128xbf16, #tpu.memory_space<vmem>>, %arg5: memref<1x512xf32, #tpu.memory_space<vmem>>, %arg6: memref<1x256xf32, #tpu.memory_space<vmem>>, %arg7: memref<1x128xf32, #tpu.memory_space<vmem>>, %arg8: memref<128x1xbf16, #tpu.memory_space<vmem>>, %arg9: memref<1x1xf32, #tpu.memory_space<vmem>>, %arg10: memref<8x1xf32, #tpu.memory_space<vmem>>, %arg11: memref<8x128xf32, #tpu.memory_space<vmem>>) attributes {dimension_semantics = [#tpu.dimension_semantics<parallel>], iteration_bounds = array<i64: 3>, scalar_prefetch = 0 : i64, scratch_operands = 0 : i64, tpu.core_type = #tpu.core_type<tc>, window_params = [{transform_indices = @transform_0, window_bounds = array<i64: 8, 1024>}, {pipeline_mode = #tpu.pipeline_mode<synchronous>, transform_indices = @transform_1, window_bounds = array<i64: 1024, 512>}, {pipeline_mode = #tpu.pipeline_mode<synchronous>, transform_indices = @transform_2, window_bounds = array<i64: 512, 256>}, {pipeline_mode = #tpu.pipeline_mode<synchronous>, transform_indices = @transform_3, window_bounds = array<i64: 256, 128>}, {pipeline_mode = #tpu.pipeline_mode<synchronous>, transform_indices = @transform_4, window_bounds = array<i64: 1, 512>}, {pipeline_mode = #tpu.pipeline_mode<synchronous>, transform_indices = @transform_5, window_bounds = array<i64: 1, 256>}, {pipeline_mode = #tpu.pipeline_mode<synchronous>, transform_indices = @transform_6, window_bounds = array<i64: 1, 128>}, {pipeline_mode = #tpu.pipeline_mode<synchronous>, transform_indices = @transform_7, window_bounds = array<i64: 128, 1>}, {pipeline_mode = #tpu.pipeline_mode<synchronous>, transform_indices = @transform_8, window_bounds = array<i64: 1, 1>}, {transform_indices = @transform_9, window_bounds = array<i64: 8, 1>}, {transform_indices = @transform_10, window_bounds = array<i64: 8, 128>}]} {
    %c0 = arith.constant 0 : index
    %c0_0 = arith.constant 0 : index
    %0 = vector.load %arg1[%c0, %c0_0] : memref<8x1024xf32, #tpu.memory_space<vmem>>, vector<8x1024xf32>
    %1 = arith.truncf %0 : vector<8x1024xf32> to vector<8x1024xbf16>
    %c0_1 = arith.constant 0 : index
    %c0_2 = arith.constant 0 : index
    %2 = vector.load %arg2[%c0_1, %c0_2] : memref<1024x512xbf16, #tpu.memory_space<vmem>>, vector<1024x512xbf16>
    %cst = arith.constant dense<0.000000e+00> : vector<8x512xf32>
    %3 = tpu.matmul %1, %2, %cst {dimension_numbers = #tpu.dot_dimension_numbers<[1], [0], [0], [1], [0, 0, 1, 1], [], []>} : vector<8x1024xbf16>, vector<1024x512xbf16>, vector<8x512xf32> -> vector<8x512xf32>
    %c0_3 = arith.constant 0 : index
    %c0_4 = arith.constant 0 : index
    %4 = vector.load %arg5[%c0_3, %c0_4] : memref<1x512xf32, #tpu.memory_space<vmem>>, vector<1x512xf32>
    %5 = vector.broadcast %4 : vector<1x512xf32> to vector<8x512xf32>
    %6 = arith.addf %3, %5 : vector<8x512xf32>
    %7 = math.tanh %6 : vector<8x512xf32>
    %8 = arith.truncf %7 : vector<8x512xf32> to vector<8x512xbf16>
    %c0_5 = arith.constant 0 : index
    %c0_6 = arith.constant 0 : index
    %9 = vector.load %arg3[%c0_5, %c0_6] : memref<512x256xbf16, #tpu.memory_space<vmem>>, vector<512x256xbf16>
    %cst_7 = arith.constant dense<0.000000e+00> : vector<8x256xf32>
    %10 = tpu.matmul %8, %9, %cst_7 {dimension_numbers = #tpu.dot_dimension_numbers<[1], [0], [0], [1], [0, 0, 1, 1], [], []>} : vector<8x512xbf16>, vector<512x256xbf16>, vector<8x256xf32> -> vector<8x256xf32>
    %c0_8 = arith.constant 0 : index
    %c0_9 = arith.constant 0 : index
    %11 = vector.load %arg6[%c0_8, %c0_9] : memref<1x256xf32, #tpu.memory_space<vmem>>, vector<1x256xf32>
    %12 = vector.broadcast %11 : vector<1x256xf32> to vector<8x256xf32>
    %13 = arith.addf %10, %12 : vector<8x256xf32>
    %14 = math.tanh %13 : vector<8x256xf32>
    %15 = arith.truncf %14 : vector<8x256xf32> to vector<8x256xbf16>
    %c0_10 = arith.constant 0 : index
    %c0_11 = arith.constant 0 : index
    %16 = vector.load %arg4[%c0_10, %c0_11] : memref<256x128xbf16, #tpu.memory_space<vmem>>, vector<256x128xbf16>
    %cst_12 = arith.constant dense<0.000000e+00> : vector<8x128xf32>
    %17 = tpu.matmul %15, %16, %cst_12 {dimension_numbers = #tpu.dot_dimension_numbers<[1], [0], [0], [1], [0, 0, 1, 1], [], []>} : vector<8x256xbf16>, vector<256x128xbf16>, vector<8x128xf32> -> vector<8x128xf32>
    %c0_13 = arith.constant 0 : index
    %c0_14 = arith.constant 0 : index
    %18 = vector.load %arg7[%c0_13, %c0_14] : memref<1x128xf32, #tpu.memory_space<vmem>>, vector<1x128xf32>
    %19 = vector.broadcast %18 : vector<1x128xf32> to vector<8x128xf32>
    %20 = arith.addf %17, %19 : vector<8x128xf32>
    %21 = math.tanh %20 : vector<8x128xf32>
    %22 = arith.truncf %21 : vector<8x128xf32> to vector<8x128xbf16>
    %c0_15 = arith.constant 0 : index
    %c0_16 = arith.constant 0 : index
    %23 = vector.load %arg11[%c0_15, %c0_16] : memref<8x128xf32, #tpu.memory_space<vmem>>, vector<8x128xf32>
    tpu.vector_store %arg11[%c0_15, %c0_16], %21 {strides = array<i32>} : memref<8x128xf32, #tpu.memory_space<vmem>>, vector<8x128xf32>,
    %c0_17 = arith.constant 0 : index
    %c0_18 = arith.constant 0 : index
    %24 = vector.load %arg8[%c0_17, %c0_18] : memref<128x1xbf16, #tpu.memory_space<vmem>>, vector<128x1xbf16>
    %cst_19 = arith.constant dense<0.000000e+00> : vector<8x1xf32>
    %25 = tpu.matmul %22, %24, %cst_19 {dimension_numbers = #tpu.dot_dimension_numbers<[1], [0], [0], [1], [0, 0, 1, 1], [], []>} : vector<8x128xbf16>, vector<128x1xbf16>, vector<8x1xf32> -> vector<8x1xf32>
    %c0_20 = arith.constant 0 : index
    %c0_21 = arith.constant 0 : index
    %26 = vector.load %arg9[%c0_20, %c0_21] : memref<1x1xf32, #tpu.memory_space<vmem>>, vector<1x1xf32>
    %27 = vector.broadcast %26 : vector<1x1xf32> to vector<8x1xf32>
    %28 = arith.addf %25, %27 : vector<8x1xf32>
    %c0_22 = arith.constant 0 : index
    %c0_23 = arith.constant 0 : index
    %29 = vector.load %arg10[%c0_22, %c0_23] : memref<8x1xf32, #tpu.memory_space<vmem>>, vector<8x1xf32>
    tpu.vector_store %arg10[%c0_22, %c0_23], %28 {strides = array<i32>} : memref<8x1xf32, #tpu.memory_space<vmem>>, vector<8x1xf32>,
    return
  }
  func.func @transform_0(%arg0: i32) -> (i32, i32) {
    %c0_i32 = arith.constant 0 : i32
    %c0_i32_0 = arith.constant 0 : i32
    return %arg0, %c0_i32 : i32, i32
  }
  func.func @transform_1(%arg0: i32) -> (i32, i32) {
    %c0_i32 = arith.constant 0 : i32
    %c0_i32_0 = arith.constant 0 : i32
    %c0_i32_1 = arith.constant 0 : i32
    return %c0_i32, %c0_i32_0 : i32, i32
  }
  func.func @transform_2(%arg0: i32) -> (i32, i32) {
    %c0_i32 = arith.constant 0 : i32
    %c0_i32_0 = arith.constant 0 : i32
    %c0_i32_1 = arith.constant 0 : i32
    return %c0_i32, %c0_i32_0 : i32, i32
  }
  func.func @transform_3(%arg0: i32) -> (i32, i32) {
    %c0_i32 = arith.constant 0 : i32
    %c0_i32_0 = arith.constant 0 : i32
    %c0_i32_1 = arith.constant 0 : i32
    return %c0_i32, %c0_i32_0 : i32, i32
  }
  func.func @transform_4(%arg0: i32) -> (i32, i32) {
    %c0_i32 = arith.constant 0 : i32
    %c0_i32_0 = arith.constant 0 : i32
    %c0_i32_1 = arith.constant 0 : i32
    return %c0_i32, %c0_i32_0 : i32, i32
  }
  func.func @transform_5(%arg0: i32) -> (i32, i32) {
    %c0_i32 = arith.constant 0 : i32
    %c0_i32_0 = arith.constant 0 : i32
    %c0_i32_1 = arith.constant 0 : i32
    return %c0_i32, %c0_i32_0 : i32, i32
  }
  func.func @transform_6(%arg0: i32) -> (i32, i32) {
    %c0_i32 = arith.constant 0 : i32
    %c0_i32_0 = arith.constant 0 : i32
    %c0_i32_1 = arith.constant 0 : i32
    return %c0_i32, %c0_i32_0 : i32, i32
  }
  func.func @transform_7(%arg0: i32) -> (i32, i32) {
    %c0_i32 = arith.constant 0 : i32
    %c0_i32_0 = arith.constant 0 : i32
    %c0_i32_1 = arith.constant 0 : i32
    return %c0_i32, %c0_i32_0 : i32, i32
  }
  func.func @transform_8(%arg0: i32) -> (i32, i32) {
    %c0_i32 = arith.constant 0 : i32
    %c0_i32_0 = arith.constant 0 : i32
    %c0_i32_1 = arith.constant 0 : i32
    return %c0_i32, %c0_i32_0 : i32, i32
  }
  func.func @transform_9(%arg0: i32) -> (i32, i32) {
    %c0_i32 = arith.constant 0 : i32
    %c0_i32_0 = arith.constant 0 : i32
    return %arg0, %c0_i32 : i32, i32
  }
  func.func @transform_10(%arg0: i32) -> (i32, i32) {
    %c0_i32 = arith.constant 0 : i32
    %c0_i32_0 = arith.constant 0 : i32
    return %arg0, %c0_i32 : i32, i32
  }
}

</mosaic_0001>

<bundles_post_ra>
// kernel: convnet_forward.1
= control target key start
LH: loop header
LB: loop body
LE: loop exit
PB: predicated region body
PF: predicated region fallthrough
CT: control target
= control target key end

     0   :  { %s4806_s0 = inlined_call_operand.vmem [shape: f32[24,1024], index: 0, kind: input, shape index: {}]   ;;  %s4807_s1 = inlined_call_operand.hbm [shape: bf16[1024,512], index: 1, kind: input, shape index: {}]   ;;  %s4808_s2 = inlined_call_operand.vmem [shape: bf16[512,256], index: 2, kind: input, shape index: {}]   ;;  %s4809_s3 = inlined_call_operand.vmem [shape: bf16[256,128], index: 3, kind: input, shape index: {}]   ;;  %s4810_s4 = inlined_call_operand.vmem [shape: f32[1,512], index: 4, kind: input, shape index: {}]   ;;  %s4811_s5 = inlined_call_operand.vmem [shape: f32[1,256], index: 5, kind: input, shape index: {}]   ;;  %s4812_s6 = inlined_call_operand.vmem [shape: f32[1,128], index: 6, kind: input, shape index: {}]   ;;  %s4813_s7 = inlined_call_operand.vmem [shape: bf16[128,1], index: 7, kind: input, shape index: {}]   ;;  %s4814_s8 = inlined_call_operand.<no memory space> [shape: f32[1,1], index: 8, kind: input, shape index: {}]   ;;  %s4815_s9 = inlined_call_operand.vmem [shape: f32[24,1], index: 9, kind: output, shape index: {0}]   ;;  %s4816_s10 = inlined_call_operand.hbm [shape: f32[24,128], index: 10, kind: output, shape index: {1}]  }
   0x1   :  { %4820 = sst [smem:[#allocation9_spill]] %s4806_s0  ;;  %v16_v0 = vstv %s4814_s8 }
   0x2   :  { %17 = vst [vmem:[#allocation2] sm:$0x1] %v16_v0 }
   0x3   :  { %18 = vsyncpa [#allocation4], 0 }
   0x4   :  { %19 = vsyncpa [#allocation5], 0 }
   0x5   :  { %21 = vsyncpa [#allocation5 + $0x1], 0  ;;  %s4364_s15 = smov 0   ;;  %s4366_s16 = smov 0  }
   0x6   :  { %s4368_s17 = smov 0   ;;  %s4370_s18 = smov 0  }
   0x7 LB: > { %s4385_s8 = sadd.s32 4294967295, %s4298_s18   ;;  %s3186_s19 = sadd.s32 4294967294, %s4298_s18   ;;  %s4298_s18 = sphi %s4370_s18, %s4834_s18   ;;  %s4294_s17 = sphi %s4368_s17, %s4833_s17   ;;  %s4290_s16 = sphi %s4366_s16, %s4832_s16   ;;  %s4286_s15 = sphi %s4364_s15, %s4831_s15  }
   0x8   : > { %s4389_s20 = sadd.s32 1, %s4298_s18   ;;  %s254_s21 = sadd.s32 1, %s4294_s17 }
   0x9   : > { %s251_s22 = ssub.s32 %s4298_s18, %s4389_s20  ;;  %p264_p0 = scmp.ne.s32.totalorder %s4294_s17, %s4290_s16 }
   0xa   : > { %p252_p1 = scmp.eq.s32.totalorder %s251_s22, 0  ;;  %p265_p2 = scmp.eq.s32.totalorder %s4385_s8, 2 }
   0xb   : > { %p270_p3 = scmp.ne.s32.totalorder %s4290_s16, %s4286_s15  ;;  %p271_p4 = scmp.eq.s32.totalorder %s3186_s19, 2 }
   0xc   : > { %s4400_s23 = scalar_select %p252_p1, %s4294_s17, %s254_s21  }
   0xd   : > { %p4402_p5 = por %p265_p2, %p264_p0  ;;  %p4406_p6 = por %p271_p4, %p270_p3 }
   0xe   : > { %p3187_p7 = scmp.ge.s32.totalorder %s4298_s18, 1  ;;  %p278_p8 = scmp.lt.s32.totalorder %s4298_s18, 4 }
   0xf   : > { %s4821_s24 = scalar_select %p4402_p5, 1, 0 }
  0x10   : > { %s4822_s25 = scalar_select %p4406_p6, 1, 0 }
  0x11   : > { %p4817_p9 = scmp.eq.s32.totalorder %s4385_s8, 0  ;;  %p4413_p10 = pnand %p3187_p7, %p278_p8 }
  0x12   : > { %s4300_s27 = smov [#allocation3]   ;;  %s4204_s12 = scalar_lea.hbm %s4807_s1, 32768 }
  0x13   : > { %s4823_s26 = scalar_select %p4413_p10, 1, 0 }
  0x14   : > { %s290_s28 = sshll.u32 %s4300_s27, 4  ;;  %p3638_p11 = pneg %p4413_p10  ;;  %s291_s28 = int_to_ptr.vmem [resolvable:$true] %s290_s28 }
  0x15   : > { %p4205_p13 = scmp.ne.s32.totalorder %s4807_s1, %s4204_s12  ;;  %p4211_p3 = scmp.lt.u32.totalorder %s4204_s12, %s4807_s1 }
  0x16   : > { %p4421_p12 = pnand %p4817_p9, %p3638_p11 }
  0x18   : > { %p4206_p0 = pneg %p4421_p12 }
  0x1a   : > { %p4207_p1 = pnand %p4206_p0, %p4205_p13 }
  0x1c   : > { %p4208_p2 = pneg %p4207_p1 }
  0x1e   : > { %p4213_p4 = pnand %p4211_p3, %p4208_p2 }
  0x20   : > { %4216 = shalt.err (!%p4213_p4)
}
  0x21   : > { %s4217_s22 = scalar_lea.vmem %s291_s28, 32768  ;;  %p4225_p9 = scmp.lt.s32.totalorder %s291_s28, %s291_s28 }
  0x22   : > { %p4218_p7 = scmp.ne.s32.totalorder %s291_s28, %s4217_s22  ;;  %p4226_p6 = scmp.lt.s32.totalorder %s4217_s22, %s4217_s22 }
  0x24   : > { %p4220_p8 = pnand %p4218_p7, %p4206_p0  ;;  %p4227_p5 = por %p4226_p6, %p4225_p9 }
  0x26   : > { %p4221_p11 = pneg %p4220_p8 }
  0x28   : > { %p4228_p10 = pnand %p4227_p5, %p4221_p11 }
  0x2a   : > { %4231 = shalt.err (!%p4228_p10)
}
  0x2b   : > { %s4301_s27 = smov 256   ;;  %s4302_s30 = smov 16  }
  0x2c   : > { %3641 = dma.hbm_to_vmem [thread:$0]  (!%p4421_p12), %s4807_s1, 32768, %s291_s28, [#allocation4], %s4301_s27, %s4301_s27, %s4302_s30  }
  0x2d   : > { %p4825_p13 = scmp.ne.s32.totalorder %s4823_s26, 0 }
  0x2e   : > { %p4826_p1 = scmp.eq.s32.totalorder (!%p4825_p13), %s4385_s8, 0 }
  0x2f   : > { %335 = sbr.rel (%p4825_p13) target bundleno = 1279 (0x4ff), region = 56 }
  0x36   : > { %4277 = dma.done.wait (%p4826_p1), [#allocation4], 32768   ;;  %p4827_p0 = pmov %p4826_p1 }
  0x37   : > { %v3686_v1 = vld [vmem:[#allocation3 + $0x4] ss:$16 sps:$4 sm:$0xff]   ;;  %v3688_v2 = vld [vmem:[#allocation3 + $0xc] ss:$16 sps:$4 sm:$0xff]   ;;  %v3690_v3 = vld [vmem:[#allocation3] ss:$16 sps:$4 sm:$0xff]  }
  0x38   : > { %4279 = vsyncadd (%p4827_p0), [#allocation4], 4294934528  ;;  %1961 = vmatprep.subr.bf16.mxu0 %v3686_v1  ;;  %v3691_v4 = vld [vmem:[#allocation3 + $0x8] ss:$16 sps:$4 sm:$0xff]   ;;  %2125 = vmatprep.subr.bf16.mxu1 %v3688_v2  ;;  %v3692_v5 = vld [vmem:[#allocation3 + $0x24] ss:$16 sps:$4 sm:$0xff]  }
  0x39   : > { %1962 = vmatpush1.bf16.msra.mxu0 %v3690_v3  ;;  %2126 = vmatpush1.bf16.msra.mxu1 %v3691_v4  ;;  %v3694_v6 = vld [vmem:[#allocation3 + $0x2c] ss:$16 sps:$4 sm:$0xff]   ;;  %v3696_v7 = vld [vmem:[#allocation3 + $0x20] ss:$16 sps:$4 sm:$0xff]   ;;  %v3697_v8 = vld [vmem:[#allocation3 + $0x28] ss:$16 sps:$4 sm:$0xff]  }
  0x3a   : > { %1963 = vmatprep.subr.bf16.mxu0 %v3692_v5  ;;  %2127 = vmatprep.subr.bf16.mxu1 %v3694_v6  ;;  %v3698_v9 = vld [vmem:[#allocation3 + $0x44] ss:$16 sps:$4 sm:$0xff]   ;;  %v3700_v10 = vld [vmem:[#allocation3 + $0x4c] ss:$16 sps:$4 sm:$0xff]   ;;  %v3702_v11 = vld [vmem:[#allocation3 + $0x40] ss:$16 sps:$4 sm:$0xff]  }
  0x3b   : > { %v3703_v12 = vld [vmem:[#allocation3 + $0x48] ss:$16 sps:$4 sm:$0xff]   ;;  %v3704_v13 = vld [vmem:[#allocation3 + $0x64] ss:$16 sps:$4 sm:$0xff]   ;;  %v3706_v14 = vld [vmem:[#allocation3 + $0x6c] ss:$16 sps:$4 sm:$0xff]  }
  0x3c   : > { %v3708_v15 = vld [vmem:[#allocation3 + $0x60] ss:$16 sps:$4 sm:$0xff]   ;;  %v3709_v16 = vld [vmem:[#allocation3 + $0x68] ss:$16 sps:$4 sm:$0xff]   ;;  %v3710_v17 = vld [vmem:[#allocation3 + $0x84] ss:$16 sps:$4 sm:$0xff]  }
  0x3d   : > { %1964 = vmatpush1.bf16.msra.mxu0 %v3696_v7  ;;  %2128 = vmatpush1.bf16.msra.mxu1 %v3697_v8  ;;  %v3712_v18 = vld [vmem:[#allocation3 + $0x8c] ss:$16 sps:$4 sm:$0xff]   ;;  %v3714_v19 = vld [vmem:[#allocation3 + $0x80] ss:$16 sps:$4 sm:$0xff]   ;;  %v3715_v20 = vld [vmem:[#allocation3 + $0x88] ss:$16 sps:$4 sm:$0xff]  }
  0x3e   : > { %1965 = vmatprep.subr.bf16.mxu0 %v3698_v9  ;;  %2129 = vmatprep.subr.bf16.mxu1 %v3700_v10  ;;  %v3716_v21 = vld [vmem:[#allocation3 + $0xa4] ss:$16 sps:$4 sm:$0xff]   ;;  %v3718_v22 = vld [vmem:[#allocation3 + $0xac] ss:$16 sps:$4 sm:$0xff]   ;;  %v3720_v23 = vld [vmem:[#allocation3 + $0xa0] ss:$16 sps:$4 sm:$0xff]  }
  0x3f   : > { %v3721_v24 = vld [vmem:[#allocation3 + $0xa8] ss:$16 sps:$4 sm:$0xff]   ;;  %v3722_v25 = vld [vmem:[#allocation3 + $0xc4] ss:$16 sps:$4 sm:$0xff]   ;;  %v3724_v26 = vld [vmem:[#allocation3 + $0xcc] ss:$16 sps:$4 sm:$0xff]  }
  0x40   : > { %v3726_v27 = vld [vmem:[#allocation3 + $0xc0] ss:$16 sps:$4 sm:$0xff]   ;;  %v3727_v28 = vld [vmem:[#allocation3 + $0xc8] ss:$16 sps:$4 sm:$0xff]   ;;  %v3728_v29 = vld [vmem:[#allocation3 + $0xe4] ss:$16 sps:$4 sm:$0xff]  }
  0x41   : > { %1966 = vmatpush1.bf16.msra.mxu0 %v3702_v11  ;;  %2130 = vmatpush1.bf16.msra.mxu1 %v3703_v12  ;;  %v3730_v30 = vld [vmem:[#allocation3 + $0xec] ss:$16 sps:$4 sm:$0xff]   ;;  %v3732_v31 = vld [vmem:[#allocation3 + $0xe0] ss:$16 sps:$4 sm:$0xff]   ;;  %v3733_v32 = vld [vmem:[#allocation3 + $0xe8] ss:$16 sps:$4 sm:$0xff]  }
  0x42   : > { %1967 = vmatprep.subr.bf16.mxu0 %v3704_v13  ;;  %2131 = vmatprep.subr.bf16.mxu1 %v3706_v14  ;;  %v3734_v33 = vld [vmem:[#allocation3 + $0x104] ss:$16 sps:$4 sm:$0xff]   ;;  %p377_p5 = scmp.lt.s32.totalorder %s4385_s8, 2  ;;  %v3736_v34 = vld [vmem:[#allocation3 + $0x10c] ss:$16 sps:$4 sm:$0xff]   ;;  %s4828_s0 = sld [smem:[#allocation9_spill]] }
  0x43   : > { %v3738_v35 = vld [vmem:[#allocation3 + $0x100] ss:$16 sps:$4 sm:$0xff]   ;;  %v3739_v36 = vld [vmem:[#allocation3 + $0x108] ss:$16 sps:$4 sm:$0xff]   ;;  %v3740_v37 = vld [vmem:[#allocation3 + $0x124] ss:$16 sps:$4 sm:$0xff]  }
  0x44   : > { %s4449_s26 = scalar_select %p377_p5, %s4385_s8, 2  ;;  %v3742_v38 = vld [vmem:[#allocation3 + $0x12c] ss:$16 sps:$4 sm:$0xff]   ;;  %v3744_v39 = vld [vmem:[#allocation3 + $0x120] ss:$16 sps:$4 sm:$0xff]   ;;  %vm4304_vm0 = vmmov 0  }
  0x45   : > { %1968 = vmatpush1.bf16.msra.mxu0 %v3708_v15  ;;  %2132 = vmatpush1.bf16.msra.mxu1 %v3709_v16  ;;  %v3745_v40 = vld [vmem:[#allocation3 + $0x128] ss:$16 sps:$4 sm:$0xff]   ;;  %v3746_v41 = vld [vmem:[#allocation3 + $0x144] ss:$16 sps:$4 sm:$0xff]   ;;  %v3748_v42 = vld [vmem:[#allocation3 + $0x14c] ss:$16 sps:$4 sm:$0xff]  }
  0x46   : > { %1969 = vmatprep.subr.bf16.mxu0 %v3710_v17  ;;  %2133 = vmatprep.subr.bf16.mxu1 %v3712_v18  ;;  %s3546_s28 = sshll.u32 %s4449_s26, 6  ;;  %v3750_v43 = vld [vmem:[#allocation3 + $0x140] ss:$16 sps:$4 sm:$0xff]   ;;  %v3751_v44 = vld [vmem:[#allocation3 + $0x148] ss:$16 sps:$4 sm:$0xff]   ;;  %s374_s13 = sand.u32 1, %s4290_s16  }
  0x47   : > { %v3752_v45 = vld [vmem:[#allocation3 + $0x164] ss:$16 sps:$4 sm:$0xff]   ;;  %v3754_v46 = vld [vmem:[#allocation3 + $0x16c] ss:$16 sps:$4 sm:$0xff]   ;;  %v3756_v48 = vld [vmem:[#allocation3 + $0x160] ss:$16 sps:$4 sm:$0xff]  }
  0x48   : > { %s4455_s14 = scalar_lea.vmem %s4828_s0, %s3546_s28  ;;  %v3757_v50 = vld [vmem:[#allocation3 + $0x168] ss:$16 sps:$4 sm:$0xff]   ;;  %v3758_v51 = vld [vmem:[#allocation3 + $0x184] ss:$16 sps:$4 sm:$0xff]   ;;  %v3760_v52 = vld [vmem:[#allocation3 + $0x18c] ss:$16 sps:$4 sm:$0xff]  }
  0x49   : > { %1970 = vmatpush1.bf16.msra.mxu0 %v3714_v19  ;;  %2134 = vmatpush1.bf16.msra.mxu1 %v3715_v20  ;;  %v388_v47 = vld [vmem:[%s4455_s14 + $0x8] sm:$0xff]  ;;  %v3762_v53 = vld [vmem:[#allocation3 + $0x180] ss:$16 sps:$4 sm:$0xff]   ;;  %s3192_s28 = sshll.u32 %s374_s13, 3  ;;  %s3543_s12 = sshll.u32 %s4385_s8, 7 }
  0x4a   : > { %1971 = vmatprep.subr.bf16.mxu0 %v3716_v21  ;;  %2135 = vmatprep.subr.bf16.mxu1 %v3718_v22  ;;  %v396_v49 = vpack.c.bf16 %v388_v47, %v388_v47  ;;  %v3763_v54 = vld [vmem:[#allocation3 + $0x188] ss:$16 sps:$4 sm:$0xff]   ;;  %v3764_v55 = vld [vmem:[#allocation3 + $0x1a4] ss:$16 sps:$4 sm:$0xff]   ;;  %v3766_v56 = vld [vmem:[#allocation3 + $0x1ac] ss:$16 sps:$4 sm:$0xff]   ;;  %s4766_s22 = scalar_lea.hbm %s4816_s10, %s3543_s12 }
  0x4b   : > { %v3768_v57 = vld [vmem:[#allocation3 + $0x1a0] ss:$16 sps:$4 sm:$0xff]   ;;  %v3769_v58 = vld [vmem:[#allocation3 + $0x1a8] ss:$16 sps:$4 sm:$0xff]   ;;  %v3770_v59 = vld [vmem:[#allocation3 + $0x1c4] ss:$16 sps:$4 sm:$0xff]  }
  0x4c   : > { %1993 = vmatprep.mubr.bf16.mxu0 %v396_v49  ;;  %2157 = vmatprep.mubr.bf16.mxu1 %v396_v49  ;;  %v3772_v60 = vld [vmem:[#allocation3 + $0x1cc] ss:$16 sps:$4 sm:$0xff]   ;;  %v3774_v61 = vld [vmem:[#allocation3 + $0x1c0] ss:$16 sps:$4 sm:$0xff]   ;;  %v3775_v62 = vld [vmem:[#allocation3 + $0x1c8] ss:$16 sps:$4 sm:$0xff]  }
  0x4d   : > { %1972 = vmatpush1.bf16.msra.mxu0 %v3720_v23  ;;  %2136 = vmatpush1.bf16.msra.mxu1 %v3721_v24  ;;  %v3776_v63 = vld [vmem:[#allocation3 + $0x1e4] ss:$16 sps:$4 sm:$0xff]   ;;  %v3778_v0 = vld [vmem:[#allocation3 + $0x1ec] ss:$16 sps:$4 sm:$0xff]   ;;  %v3780_v1 = vld [vmem:[#allocation3 + $0x1e0] ss:$16 sps:$4 sm:$0xff]  }
  0x4e   : > { %1973 = vmatprep.subr.bf16.mxu0 %v3722_v25  ;;  %2137 = vmatprep.subr.bf16.mxu1 %v3724_v26  ;;  %v3781_v2 = vld [vmem:[#allocation3 + $0x1e8] ss:$16 sps:$4 sm:$0xff]   ;;  %v387_v3 = vld [vmem:[%s4455_s14] sm:$0xff]  ;;  %s376_s29 = scalar_lea.vmem [#allocation6], %s3192_s28  ;;  %s3075_s27 = scalar_lea.sflag [#allocation5], %s374_s13 }
  0x4f   : > { %v3784_v4 = vld [vmem:[#allocation3 + $0x204] ss:$16 sps:$4 sm:$0xff]   ;;  %v3787_v5 = vld [vmem:[#allocation3 + $0x20c] ss:$16 sps:$4 sm:$0xff]   ;;  %v395_v6 = vpack.c.bf16 %v387_v3, %v387_v3  ;;  %v3782_v7 = vld [vmem:[#allocation3 + $0x200] ss:$16 sps:$4 sm:$0xff]  }
  0x50   : > { %v3785_v8 = vld [vmem:[#allocation3 + $0x208] ss:$16 sps:$4 sm:$0xff]   ;;  %v3790_v9 = vld [vmem:[#allocation3 + $0x224] ss:$16 sps:$4 sm:$0xff]   ;;  %v3793_v10 = vld [vmem:[#allocation3 + $0x22c] ss:$16 sps:$4 sm:$0xff]  }
  0x51   : > { %1974 = vmatpush1.bf16.msra.mxu0 %v3726_v27  ;;  %2138 = vmatpush1.bf16.msra.mxu1 %v3727_v28  ;;  %v3788_v11 = vld [vmem:[#allocation3 + $0x220] ss:$16 sps:$4 sm:$0xff]   ;;  %v3791_v12 = vld [vmem:[#allocation3 + $0x228] ss:$16 sps:$4 sm:$0xff]   ;;  %v3796_v13 = vld [vmem:[#allocation3 + $0x244] ss:$16 sps:$4 sm:$0xff]  }
  0x52   : > { %1975 = vmatprep.subr.bf16.mxu0 %v3728_v29  ;;  %2139 = vmatprep.subr.bf16.mxu1 %v3730_v30  ;;  %v3799_v14 = vld [vmem:[#allocation3 + $0x24c] ss:$16 sps:$4 sm:$0xff]   ;;  %v3794_v15 = vld [vmem:[#allocation3 + $0x240] ss:$16 sps:$4 sm:$0xff]   ;;  %v3797_v16 = vld [vmem:[#allocation3 + $0x248] ss:$16 sps:$4 sm:$0xff]  }
  0x53   : > { %v3802_v17 = vld [vmem:[#allocation3 + $0x264] ss:$16 sps:$4 sm:$0xff]   ;;  %v3805_v18 = vld [vmem:[#allocation3 + $0x26c] ss:$16 sps:$4 sm:$0xff]   ;;  %v3800_v19 = vld [vmem:[#allocation3 + $0x260] ss:$16 sps:$4 sm:$0xff]  }
  0x54   : > { %v3803_v20 = vld [vmem:[#allocation3 + $0x268] ss:$16 sps:$4 sm:$0xff]   ;;  %v3808_v21 = vld [vmem:[#allocation3 + $0x284] ss:$16 sps:$4 sm:$0xff]   ;;  %v3811_v22 = vld [vmem:[#allocation3 + $0x28c] ss:$16 sps:$4 sm:$0xff]  }
  0x55   : > { %1976 = vmatpush1.bf16.msra.mxu0 %v3732_v31  ;;  %2140 = vmatpush1.bf16.msra.mxu1 %v3733_v32  ;;  %v3806_v23 = vld [vmem:[#allocation3 + $0x280] ss:$16 sps:$4 sm:$0xff]   ;;  %v3809_v24 = vld [vmem:[#allocation3 + $0x288] ss:$16 sps:$4 sm:$0xff]   ;;  %v3814_v25 = vld [vmem:[#allocation3 + $0x2a4] ss:$16 sps:$4 sm:$0xff]  }
  0x56   : > { %1977 = vmatprep.subr.bf16.mxu0 %v3734_v33  ;;  %2141 = vmatprep.subr.bf16.mxu1 %v3736_v34  ;;  %v3817_v26 = vld [vmem:[#allocation3 + $0x2ac] ss:$16 sps:$4 sm:$0xff]   ;;  %v3812_v27 = vld [vmem:[#allocation3 + $0x2a0] ss:$16 sps:$4 sm:$0xff]   ;;  %v3815_v28 = vld [vmem:[#allocation3 + $0x2a8] ss:$16 sps:$4 sm:$0xff]  }
  0x57   : > { %v3820_v29 = vld [vmem:[#allocation3 + $0x2c4] ss:$16 sps:$4 sm:$0xff]   ;;  %v3823_v30 = vld [vmem:[#allocation3 + $0x2cc] ss:$16 sps:$4 sm:$0xff]   ;;  %v3818_v32 = vld [vmem:[#allocation3 + $0x2c0] ss:$16 sps:$4 sm:$0xff]  }
  0x58   : > { %v390_v31 = vld [vmem:[%s4455_s14 + $0x18] sm:$0xff]  ;;  %v3842_v49 = vld [vmem:[#allocation3 + $0x340] ss:$16 sps:$4 sm:$0xff]   ;;  %p4829_p9 = scmp.ne.s32.totalorder %s4821_s24, 0  ;;  %s4305_s11 = smov [#allocation6]  }
  0x59   : > { %1978 = vmatpush1.bf16.msra.mxu0 %v3738_v35  ;;  %2142 = vmatpush1.bf16.msra.mxu1 %v3739_v36  ;;  %v398_v33 = vpack.c.bf16 %v390_v31, %v390_v31  ;;  %v3821_v34 = vld [vmem:[#allocation3 + $0x2c8] ss:$16 sps:$4 sm:$0xff]   ;;  %v3826_v35 = vld [vmem:[#allocation3 + $0x2e4] ss:$16 sps:$4 sm:$0xff]   ;;  %v3829_v36 = vld [vmem:[#allocation3 + $0x2ec] ss:$16 sps:$4 sm:$0xff]  }
  0x5a   : > { %1979 = vmatprep.subr.bf16.mxu0 %v3740_v37  ;;  %2143 = vmatprep.subr.bf16.mxu1 %v3742_v38  ;;  %v3824_v37 = vld [vmem:[#allocation3 + $0x2e0] ss:$16 sps:$4 sm:$0xff]   ;;  %v3827_v38 = vld [vmem:[#allocation3 + $0x2e8] ss:$16 sps:$4 sm:$0xff]   ;;  %v3844_v47 = vld [vmem:[#allocation3 + $0x344] ss:$16 sps:$4 sm:$0xff]  }
  0x5b   : > { %v3874_v3 = vld [vmem:[#allocation3 + $0x3e4] ss:$16 sps:$4 sm:$0xff]   ;;  %s4236_s0 = sshll.u32 %s4305_s11, 4  ;;  %s4237_s0 = int_to_ptr.vmem [resolvable:$false] %s4236_s0 }
  0x5c   : > { %v3910_v31 = vld [vmem:[#allocation3 + $0x4a4] ss:$16 sps:$4 sm:$0xff]   ;;  %s4238_s28 = scalar_lea.vmem %s4237_s0, 256 }
  0x5d   : > { %1980 = vmatpush1.bf16.msra.mxu0 %v3744_v39  ;;  %2144 = vmatpush1.bf16.msra.mxu1 %v3745_v40  ;;  %v3832_v39 = vld [vmem:[#allocation3 + $0x304] ss:$16 sps:$4 sm:$0xff]   ;;  %v3835_v40 = vld [vmem:[#allocation3 + $0x30c] ss:$16 sps:$4 sm:$0xff]  }
  0x5e   : > { %1981 = vmatprep.subr.bf16.mxu0 %v3746_v41  ;;  %2145 = vmatprep.subr.bf16.mxu1 %v3748_v42  ;;  %v3830_v41 = vld [vmem:[#allocation3 + $0x300] ss:$16 sps:$4 sm:$0xff]   ;;  %v3833_v42 = vld [vmem:[#allocation3 + $0x308] ss:$16 sps:$4 sm:$0xff]  }
  0x61   : > { %1982 = vmatpush1.bf16.msra.mxu0 %v3750_v43  ;;  %2146 = vmatpush1.bf16.msra.mxu1 %v3751_v44  ;;  %v3838_v43 = vld [vmem:[#allocation3 + $0x324] ss:$16 sps:$4 sm:$0xff]   ;;  %v3841_v44 = vld [vmem:[#allocation3 + $0x32c] ss:$16 sps:$4 sm:$0xff]  }
  0x62   : > { %1983 = vmatprep.subr.bf16.mxu0 %v3752_v45  ;;  %2147 = vmatprep.subr.bf16.mxu1 %v3754_v46  ;;  %v3836_v45 = vld [vmem:[#allocation3 + $0x320] ss:$16 sps:$4 sm:$0xff]   ;;  %v3839_v46 = vld [vmem:[#allocation3 + $0x328] ss:$16 sps:$4 sm:$0xff]  }
  0x65   : > { %1984 = vmatpush1.bf16.msra.mxu0 %v3756_v48  ;;  %2148 = vmatpush1.bf16.msra.mxu1 %v3757_v50  ;;  %v3847_v48 = vld [vmem:[#allocation3 + $0x34c] ss:$16 sps:$4 sm:$0xff]   ;;  %v3845_v50 = vld [vmem:[#allocation3 + $0x348] ss:$16 sps:$4 sm:$0xff]  }
  0x66   : > { %1985 = vmatprep.subr.bf16.mxu0 %v3758_v51  ;;  %2149 = vmatprep.subr.bf16.mxu1 %v3760_v52  ;;  %v3850_v51 = vld [vmem:[#allocation3 + $0x364] ss:$16 sps:$4 sm:$0xff]   ;;  %v3853_v52 = vld [vmem:[#allocation3 + $0x36c] ss:$16 sps:$4 sm:$0xff]  }
  0x69   : > { %1986 = vmatpush1.bf16.msra.mxu0 %v3762_v53  ;;  %2150 = vmatpush1.bf16.msra.mxu1 %v3763_v54  ;;  %v3848_v53 = vld [vmem:[#allocation3 + $0x360] ss:$16 sps:$4 sm:$0xff]   ;;  %v3851_v54 = vld [vmem:[#allocation3 + $0x368] ss:$16 sps:$4 sm:$0xff]  }
  0x6a   : > { %1987 = vmatprep.subr.bf16.mxu0 %v3764_v55  ;;  %2151 = vmatprep.subr.bf16.mxu1 %v3766_v56  ;;  %v3856_v55 = vld [vmem:[#allocation3 + $0x384] ss:$16 sps:$4 sm:$0xff]   ;;  %v3859_v56 = vld [vmem:[#allocation3 + $0x38c] ss:$16 sps:$4 sm:$0xff]  }
  0x6d   : > { %1988 = vmatpush1.bf16.msra.mxu0 %v3768_v57  ;;  %2152 = vmatpush1.bf16.msra.mxu1 %v3769_v58  ;;  %v3854_v57 = vld [vmem:[#allocation3 + $0x380] ss:$16 sps:$4 sm:$0xff]   ;;  %v3857_v58 = vld [vmem:[#allocation3 + $0x388] ss:$16 sps:$4 sm:$0xff]  }
  0x6e   : > { %1989 = vmatprep.subr.bf16.mxu0 %v3770_v59  ;;  %2153 = vmatprep.subr.bf16.mxu1 %v3772_v60  ;;  %v3862_v59 = vld [vmem:[#allocation3 + $0x3a4] ss:$16 sps:$4 sm:$0xff]   ;;  %v3865_v60 = vld [vmem:[#allocation3 + $0x3ac] ss:$16 sps:$4 sm:$0xff]  }
  0x71   : > { %1990 = vmatpush1.bf16.msra.mxu0 %v3774_v61  ;;  %2154 = vmatpush1.bf16.msra.mxu1 %v3775_v62  ;;  %v3860_v61 = vld [vmem:[#allocation3 + $0x3a0] ss:$16 sps:$4 sm:$0xff]   ;;  %v3863_v62 = vld [vmem:[#allocation3 + $0x3a8] ss:$16 sps:$4 sm:$0xff]  }
  0x72   : > { %1991 = vmatprep.subr.bf16.mxu0 %v3776_v63  ;;  %2155 = vmatprep.subr.bf16.mxu1 %v3778_v0  ;;  %v3868_v63 = vld [vmem:[#allocation3 + $0x3c4] ss:$16 sps:$4 sm:$0xff]   ;;  %v3871_v0 = vld [vmem:[#allocation3 + $0x3cc] ss:$16 sps:$4 sm:$0xff]  }
  0x75   : > { %1992 = vmatpush1.bf16.msra.mxu0 %v3780_v1  ;;  %2156 = vmatpush1.bf16.msra.mxu1 %v3781_v2  ;;  %v3866_v1 = vld [vmem:[#allocation3 + $0x3c0] ss:$16 sps:$4 sm:$0xff]   ;;  %v3869_v2 = vld [vmem:[#allocation3 + $0x3c8] ss:$16 sps:$4 sm:$0xff]  }
  0x76   : > { %2002 = vmatprep.subr.bf16.mxu0 %v3784_v4  ;;  %2166 = vmatprep.subr.bf16.mxu1 %v3787_v5  ;;  %v3877_v4 = vld [vmem:[#allocation3 + $0x3ec] ss:$16 sps:$4 sm:$0xff]   ;;  %v3872_v5 = vld [vmem:[#allocation3 + $0x3e0] ss:$16 sps:$4 sm:$0xff]  }
  0x78   : > { %1994 = vmatmul.mubr.bf16.vlgmr.msra.gmra.mrb[0].mxu0 %v395_v6  ;;  %2158 = vmatmul.mubr.bf16.vlgmr.msra.gmra.mrb[0].mxu1 %v395_v6  ;;  %v3875_v6 = vld [vmem:[#allocation3 + $0x3e8] ss:$16 sps:$4 sm:$0xff]  }
  0x79   : > { %2003 = vmatpush1.bf16.msra.mxu0 %v3782_v7  ;;  %2167 = vmatpush1.bf16.msra.mxu1 %v3785_v8  ;;  %v3880_v7 = vld [vmem:[#allocation3 + $0x404] ss:$16 sps:$4 sm:$0xff]  }
  0x7a   : > { %2004 = vmatprep.subr.bf16.mxu0 %v3790_v9  ;;  %2168 = vmatprep.subr.bf16.mxu1 %v3793_v10  ;;  %v389_v8 = vld [vmem:[%s4455_s14 + $0x10] sm:$0xff] }
  0x7b   : > { %2034 = vmatprep.mubr.bf16.mxu0 %v398_v33  ;;  %2198 = vmatprep.mubr.bf16.mxu1 %v398_v33  ;;  %v3883_v9 = vld [vmem:[#allocation3 + $0x40c] ss:$16 sps:$4 sm:$0xff]   ;;  %v3878_v10 = vld [vmem:[#allocation3 + $0x400] ss:$16 sps:$4 sm:$0xff]  }
  0x7c   : > { %v3908_v33 = vld [vmem:[#allocation3 + $0x4a0] ss:$16 sps:$4 sm:$0xff]  }
  0x7d   : > { %2005 = vmatpush1.bf16.msra.mxu0 %v3788_v11  ;;  %2169 = vmatpush1.bf16.msra.mxu1 %v3791_v12  ;;  %v3881_v11 = vld [vmem:[#allocation3 + $0x408] ss:$16 sps:$4 sm:$0xff]   ;;  %v397_v12 = vpack.c.bf16 %v389_v8, %v389_v8  ;;  %v3973_v8 = vld [vmem:[#allocation3 + $0x5ec] ss:$16 sps:$4 sm:$0xff]  }
  0x7e   : > { %2006 = vmatprep.subr.bf16.mxu0 %v3796_v13  ;;  %2170 = vmatprep.subr.bf16.mxu1 %v3799_v14  ;;  %v3886_v13 = vld [vmem:[#allocation3 + $0x424] ss:$16 sps:$4 sm:$0xff]   ;;  %v3889_v14 = vld [vmem:[#allocation3 + $0x42c] ss:$16 sps:$4 sm:$0xff]  }
  0x81   : > { %2007 = vmatpush1.bf16.msra.mxu0 %v3794_v15  ;;  %2171 = vmatpush1.bf16.msra.mxu1 %v3797_v16  ;;  %v392_v15 = vld [vmem:[%s4455_s14 + $0x28] sm:$0xff] }
  0x82   : > { %2008 = vmatprep.subr.bf16.mxu0 %v3802_v17  ;;  %2172 = vmatprep.subr.bf16.mxu1 %v3805_v18  ;;  %v400_v16 = vpack.c.bf16 %v392_v15, %v392_v15  ;;  %v3884_v17 = vld [vmem:[#allocation3 + $0x420] ss:$16 sps:$4 sm:$0xff]   ;;  %v3887_v18 = vld [vmem:[#allocation3 + $0x428] ss:$16 sps:$4 sm:$0xff]  }
  0x83   : > { %v3974_v15 = vld [vmem:[#allocation3 + $0x600] ss:$16 sps:$4 sm:$0xff]  }
  0x85   : > { %2009 = vmatpush1.bf16.msra.mxu0 %v3800_v19  ;;  %2173 = vmatpush1.bf16.msra.mxu1 %v3803_v20  ;;  %v3892_v19 = vld [vmem:[#allocation3 + $0x444] ss:$16 sps:$4 sm:$0xff]   ;;  %v3895_v20 = vld [vmem:[#allocation3 + $0x44c] ss:$16 sps:$4 sm:$0xff]  }
  0x86   : > { %2010 = vmatprep.subr.bf16.mxu0 %v3808_v21  ;;  %2174 = vmatprep.subr.bf16.mxu1 %v3811_v22  ;;  %v3890_v21 = vld [vmem:[#allocation3 + $0x440] ss:$16 sps:$4 sm:$0xff]   ;;  %v3893_v22 = vld [vmem:[#allocation3 + $0x448] ss:$16 sps:$4 sm:$0xff]  }
  0x89   : > { %2011 = vmatpush1.bf16.msra.mxu0 %v3806_v23  ;;  %2175 = vmatpush1.bf16.msra.mxu1 %v3809_v24  ;;  %v3898_v23 = vld [vmem:[#allocation3 + $0x464] ss:$16 sps:$4 sm:$0xff]   ;;  %v3901_v24 = vld [vmem:[#allocation3 + $0x46c] ss:$16 sps:$4 sm:$0xff]  }
  0x8a   : > { %2012 = vmatprep.subr.bf16.mxu0 %v3814_v25  ;;  %2176 = vmatprep.subr.bf16.mxu1 %v3817_v26  ;;  %v3896_v25 = vld [vmem:[#allocation3 + $0x460] ss:$16 sps:$4 sm:$0xff]   ;;  %v3899_v26 = vld [vmem:[#allocation3 + $0x468] ss:$16 sps:$4 sm:$0xff]  }
  0x8d   : > { %2013 = vmatpush1.bf16.msra.mxu0 %v3812_v27  ;;  %2177 = vmatpush1.bf16.msra.mxu1 %v3815_v28  ;;  %v3904_v27 = vld [vmem:[#allocation3 + $0x484] ss:$16 sps:$4 sm:$0xff]   ;;  %v3907_v28 = vld [vmem:[#allocation3 + $0x48c] ss:$16 sps:$4 sm:$0xff]  }
  0x8e   : > { %2014 = vmatprep.subr.bf16.mxu0 %v3820_v29  ;;  %2178 = vmatprep.subr.bf16.mxu1 %v3823_v30  ;;  %v3902_v29 = vld [vmem:[#allocation3 + $0x480] ss:$16 sps:$4 sm:$0xff]   ;;  %v3905_v30 = vld [vmem:[#allocation3 + $0x488] ss:$16 sps:$4 sm:$0xff]  }
  0x91   : > { %2015 = vmatpush1.bf16.msra.mxu0 %v3818_v32  ;;  %2179 = vmatpush1.bf16.msra.mxu1 %v3821_v34  ;;  %v3913_v32 = vld [vmem:[#allocation3 + $0x4ac] ss:$16 sps:$4 sm:$0xff]   ;;  %v3911_v34 = vld [vmem:[#allocation3 + $0x4a8] ss:$16 sps:$4 sm:$0xff]  }
  0x92   : > { %2016 = vmatprep.subr.bf16.mxu0 %v3826_v35  ;;  %2180 = vmatprep.subr.bf16.mxu1 %v3829_v36  ;;  %v3916_v35 = vld [vmem:[#allocation3 + $0x4c4] ss:$16 sps:$4 sm:$0xff]   ;;  %v3919_v36 = vld [vmem:[#allocation3 + $0x4cc] ss:$16 sps:$4 sm:$0xff]  }
  0x95   : > { %2017 = vmatpush1.bf16.msra.mxu0 %v3824_v37  ;;  %2181 = vmatpush1.bf16.msra.mxu1 %v3827_v38  ;;  %v3914_v37 = vld [vmem:[#allocation3 + $0x4c0] ss:$16 sps:$4 sm:$0xff]   ;;  %v3917_v38 = vld [vmem:[#allocation3 + $0x4c8] ss:$16 sps:$4 sm:$0xff]  }
  0x96   : > { %2018 = vmatprep.subr.bf16.mxu0 %v3832_v39  ;;  %2182 = vmatprep.subr.bf16.mxu1 %v3835_v40  ;;  %v3922_v39 = vld [vmem:[#allocation3 + $0x4e4] ss:$16 sps:$4 sm:$0xff]   ;;  %v3925_v40 = vld [vmem:[#allocation3 + $0x4ec] ss:$16 sps:$4 sm:$0xff]  }
  0x99   : > { %2019 = vmatpush1.bf16.msra.mxu0 %v3830_v41  ;;  %2183 = vmatpush1.bf16.msra.mxu1 %v3833_v42  ;;  %v3920_v41 = vld [vmem:[#allocation3 + $0x4e0] ss:$16 sps:$4 sm:$0xff]   ;;  %v3923_v42 = vld [vmem:[#allocation3 + $0x4e8] ss:$16 sps:$4 sm:$0xff]  }
  0x9a   : > { %2020 = vmatprep.subr.bf16.mxu0 %v3838_v43  ;;  %2184 = vmatprep.subr.bf16.mxu1 %v3841_v44  ;;  %v3928_v43 = vld [vmem:[#allocation3 + $0x504] ss:$16 sps:$4 sm:$0xff]   ;;  %v3931_v44 = vld [vmem:[#allocation3 + $0x50c] ss:$16 sps:$4 sm:$0xff]  }
  0x9d   : > { %2021 = vmatpush1.bf16.msra.mxu0 %v3836_v45  ;;  %2185 = vmatpush1.bf16.msra.mxu1 %v3839_v46  ;;  %v3926_v45 = vld [vmem:[#allocation3 + $0x500] ss:$16 sps:$4 sm:$0xff]   ;;  %v3929_v46 = vld [vmem:[#allocation3 + $0x508] ss:$16 sps:$4 sm:$0xff]  }
  0x9e   : > { %2022 = vmatprep.subr.bf16.mxu0 %v3844_v47  ;;  %2186 = vmatprep.subr.bf16.mxu1 %v3847_v48  ;;  %v3934_v47 = vld [vmem:[#allocation3 + $0x524] ss:$16 sps:$4 sm:$0xff]   ;;  %v3937_v48 = vld [vmem:[#allocation3 + $0x52c] ss:$16 sps:$4 sm:$0xff]  }
  0xa1   : > { %2023 = vmatpush1.bf16.msra.mxu0 %v3842_v49  ;;  %2187 = vmatpush1.bf16.msra.mxu1 %v3845_v50  ;;  %v3932_v49 = vld [vmem:[#allocation3 + $0x520] ss:$16 sps:$4 sm:$0xff]   ;;  %v3935_v50 = vld [vmem:[#allocation3 + $0x528] ss:$16 sps:$4 sm:$0xff]  }
  0xa2   : > { %2024 = vmatprep.subr.bf16.mxu0 %v3850_v51  ;;  %2188 = vmatprep.subr.bf16.mxu1 %v3853_v52  ;;  %v3940_v51 = vld [vmem:[#allocation3 + $0x544] ss:$16 sps:$4 sm:$0xff]   ;;  %v3943_v52 = vld [vmem:[#allocation3 + $0x54c] ss:$16 sps:$4 sm:$0xff]  }
  0xa5   : > { %2025 = vmatpush1.bf16.msra.mxu0 %v3848_v53  ;;  %2189 = vmatpush1.bf16.msra.mxu1 %v3851_v54  ;;  %v3938_v53 = vld [vmem:[#allocation3 + $0x540] ss:$16 sps:$4 sm:$0xff]   ;;  %v3941_v54 = vld [vmem:[#allocation3 + $0x548] ss:$16 sps:$4 sm:$0xff]  }
  0xa6   : > { %2026 = vmatprep.subr.bf16.mxu0 %v3856_v55  ;;  %2190 = vmatprep.subr.bf16.mxu1 %v3859_v56  ;;  %v3946_v55 = vld [vmem:[#allocation3 + $0x564] ss:$16 sps:$4 sm:$0xff]   ;;  %v3949_v56 = vld [vmem:[#allocation3 + $0x56c] ss:$16 sps:$4 sm:$0xff]  }
  0xa9   : > { %2027 = vmatpush1.bf16.msra.mxu0 %v3854_v57  ;;  %2191 = vmatpush1.bf16.msra.mxu1 %v3857_v58  ;;  %v3944_v57 = vld [vmem:[#allocation3 + $0x560] ss:$16 sps:$4 sm:$0xff]   ;;  %v3947_v58 = vld [vmem:[#allocation3 + $0x568] ss:$16 sps:$4 sm:$0xff]  }
  0xaa   : > { %2028 = vmatprep.subr.bf16.mxu0 %v3862_v59  ;;  %2192 = vmatprep.subr.bf16.mxu1 %v3865_v60  ;;  %v3952_v59 = vld [vmem:[#allocation3 + $0x584] ss:$16 sps:$4 sm:$0xff]   ;;  %v3955_v60 = vld [vmem:[#allocation3 + $0x58c] ss:$16 sps:$4 sm:$0xff]  }
  0xad   : > { %2029 = vmatpush1.bf16.msra.mxu0 %v3860_v61  ;;  %2193 = vmatpush1.bf16.msra.mxu1 %v3863_v62  ;;  %v3950_v61 = vld [vmem:[#allocation3 + $0x580] ss:$16 sps:$4 sm:$0xff]   ;;  %v3953_v62 = vld [vmem:[#allocation3 + $0x588] ss:$16 sps:$4 sm:$0xff]  }
  0xae   : > { %2030 = vmatprep.subr.bf16.mxu0 %v3868_v63  ;;  %2194 = vmatprep.subr.bf16.mxu1 %v3871_v0  ;;  %v3958_v63 = vld [vmem:[#allocation3 + $0x5a4] ss:$16 sps:$4 sm:$0xff]   ;;  %v3961_v0 = vld [vmem:[#allocation3 + $0x5ac] ss:$16 sps:$4 sm:$0xff]  }
  0xb1   : > { %2031 = vmatpush1.bf16.msra.mxu0 %v3866_v1  ;;  %2195 = vmatpush1.bf16.msra.mxu1 %v3869_v2  ;;  %v3956_v1 = vld [vmem:[#allocation3 + $0x5a0] ss:$16 sps:$4 sm:$0xff]   ;;  %v3959_v2 = vld [vmem:[#allocation3 + $0x5a8] ss:$16 sps:$4 sm:$0xff]  }
  0xb2   : > { %2032 = vmatprep.subr.bf16.mxu0 %v3874_v3  ;;  %2196 = vmatprep.subr.bf16.mxu1 %v3877_v4  ;;  %v3964_v3 = vld [vmem:[#allocation3 + $0x5c4] ss:$16 sps:$4 sm:$0xff]   ;;  %v3967_v4 = vld [vmem:[#allocation3 + $0x5cc] ss:$16 sps:$4 sm:$0xff]  }
  0xb5   : > { %2033 = vmatpush1.bf16.msra.mxu0 %v3872_v5  ;;  %2197 = vmatpush1.bf16.msra.mxu1 %v3875_v6  ;;  %v3962_v5 = vld [vmem:[#allocation3 + $0x5c0] ss:$16 sps:$4 sm:$0xff]   ;;  %v3965_v6 = vld [vmem:[#allocation3 + $0x5c8] ss:$16 sps:$4 sm:$0xff]  }
  0xb6   : > { %2043 = vmatprep.subr.bf16.mxu0 %v3880_v7  ;;  %2207 = vmatprep.subr.bf16.mxu1 %v3883_v9  ;;  %v3970_v7 = vld [vmem:[#allocation3 + $0x5e4] ss:$16 sps:$4 sm:$0xff]   ;;  %v3968_v9 = vld [vmem:[#allocation3 + $0x5e0] ss:$16 sps:$4 sm:$0xff]  }
  0xb8   : > { %2035 = vmatmul.mubr.bf16.vlgmr.msra.gmra.mrb[0].mxu0 %v397_v12  ;;  %2199 = vmatmul.mubr.bf16.vlgmr.msra.gmra.mrb[0].mxu1 %v397_v12  ;;  %v391_v12 = vld [vmem:[%s4455_s14 + $0x20] sm:$0xff] }
  0xb9   : > { %2044 = vmatpush1.bf16.msra.mxu0 %v3878_v10  ;;  %2208 = vmatpush1.bf16.msra.mxu1 %v3881_v11  ;;  %v3971_v10 = vld [vmem:[#allocation3 + $0x5e8] ss:$16 sps:$4 sm:$0xff]   ;;  %v3976_v11 = vld [vmem:[#allocation3 + $0x604] ss:$16 sps:$4 sm:$0xff]  }
  0xba   : > { %2045 = vmatprep.subr.bf16.mxu0 %v3886_v13  ;;  %2209 = vmatprep.subr.bf16.mxu1 %v3889_v14  ;;  %v3979_v13 = vld [vmem:[#allocation3 + $0x60c] ss:$16 sps:$4 sm:$0xff]  }
  0xbb   : > { %2075 = vmatprep.mubr.bf16.mxu0 %v400_v16  ;;  %2239 = vmatprep.mubr.bf16.mxu1 %v400_v16  ;;  %v394_v14 = vld [vmem:[%s4455_s14 + $0x38] sm:$0xff] }
  0xbc   : > { %v3977_v16 = vld [vmem:[#allocation3 + $0x608] ss:$16 sps:$4 sm:$0xff]  }
  0xbd   : > { %2046 = vmatpush1.bf16.msra.mxu0 %v3884_v17  ;;  %2210 = vmatpush1.bf16.msra.mxu1 %v3887_v18  ;;  %v399_v17 = vpack.c.bf16 %v391_v12, %v391_v12  ;;  %v3982_v18 = vld [vmem:[#allocation3 + $0x624] ss:$16 sps:$4 sm:$0xff]   ;;  %v4069_v12 = vld [vmem:[#allocation3 + $0x7ec] ss:$16 sps:$4 sm:$0xff]  }
  0xbe   : > { %2047 = vmatprep.subr.bf16.mxu0 %v3892_v19  ;;  %2211 = vmatprep.subr.bf16.mxu1 %v3895_v20  ;;  %v3985_v19 = vld [vmem:[#allocation3 + $0x62c] ss:$16 sps:$4 sm:$0xff]   ;;  %v3980_v20 = vld [vmem:[#allocation3 + $0x620] ss:$16 sps:$4 sm:$0xff]  }
  0xc1   : > { %2048 = vmatpush1.bf16.msra.mxu0 %v3890_v21  ;;  %2212 = vmatpush1.bf16.msra.mxu1 %v3893_v22  ;;  %v3983_v21 = vld [vmem:[#allocation3 + $0x628] ss:$16 sps:$4 sm:$0xff]   ;;  %v402_v22 = vpack.c.bf16 %v394_v14, %v394_v14 }
  0xc2   : > { %2049 = vmatprep.subr.bf16.mxu0 %v3898_v23  ;;  %2213 = vmatprep.subr.bf16.mxu1 %v3901_v24  ;;  %v3988_v23 = vld [vmem:[#allocation3 + $0x644] ss:$16 sps:$4 sm:$0xff]   ;;  %v3991_v24 = vld [vmem:[#allocation3 + $0x64c] ss:$16 sps:$4 sm:$0xff]   ;;  %v4067_v14 = vld [vmem:[#allocation3 + $0x7e8] ss:$16 sps:$4 sm:$0xff]  }
  0xc5   : > { %2050 = vmatpush1.bf16.msra.mxu0 %v3896_v25  ;;  %2214 = vmatpush1.bf16.msra.mxu1 %v3899_v26  ;;  %v3986_v25 = vld [vmem:[#allocation3 + $0x640] ss:$16 sps:$4 sm:$0xff]   ;;  %v3989_v26 = vld [vmem:[#allocation3 + $0x648] ss:$16 sps:$4 sm:$0xff]  }
  0xc6   : > { %2051 = vmatprep.subr.bf16.mxu0 %v3904_v27  ;;  %2215 = vmatprep.subr.bf16.mxu1 %v3907_v28  ;;  %v3994_v27 = vld [vmem:[#allocation3 + $0x664] ss:$16 sps:$4 sm:$0xff]   ;;  %v3997_v28 = vld [vmem:[#allocation3 + $0x66c] ss:$16 sps:$4 sm:$0xff]  }
  0xc9   : > { %2052 = vmatpush1.bf16.msra.mxu0 %v3902_v29  ;;  %2216 = vmatpush1.bf16.msra.mxu1 %v3905_v30  ;;  %v3992_v29 = vld [vmem:[#allocation3 + $0x660] ss:$16 sps:$4 sm:$0xff]   ;;  %v3995_v30 = vld [vmem:[#allocation3 + $0x668] ss:$16 sps:$4 sm:$0xff]  }
  0xca   : > { %2053 = vmatprep.subr.bf16.mxu0 %v3910_v31  ;;  %2217 = vmatprep.subr.bf16.mxu1 %v3913_v32  ;;  %v4000_v31 = vld [vmem:[#allocation3 + $0x684] ss:$16 sps:$4 sm:$0xff]   ;;  %v4003_v32 = vld [vmem:[#allocation3 + $0x68c] ss:$16 sps:$4 sm:$0xff]  }
  0xcd   : > { %2054 = vmatpush1.bf16.msra.mxu0 %v3908_v33  ;;  %2218 = vmatpush1.bf16.msra.mxu1 %v3911_v34  ;;  %v3998_v33 = vld [vmem:[#allocation3 + $0x680] ss:$16 sps:$4 sm:$0xff]   ;;  %v4001_v34 = vld [vmem:[#allocation3 + $0x688] ss:$16 sps:$4 sm:$0xff]  }
  0xce   : > { %2055 = vmatprep.subr.bf16.mxu0 %v3916_v35  ;;  %2219 = vmatprep.subr.bf16.mxu1 %v3919_v36  ;;  %v4006_v35 = vld [vmem:[#allocation3 + $0x6a4] ss:$16 sps:$4 sm:$0xff]   ;;  %v4009_v36 = vld [vmem:[#allocation3 + $0x6ac] ss:$16 sps:$4 sm:$0xff]  }
  0xd1   : > { %2056 = vmatpush1.bf16.msra.mxu0 %v3914_v37  ;;  %2220 = vmatpush1.bf16.msra.mxu1 %v3917_v38  ;;  %v4004_v37 = vld [vmem:[#allocation3 + $0x6a0] ss:$16 sps:$4 sm:$0xff]   ;;  %v4007_v38 = vld [vmem:[#allocation3 + $0x6a8] ss:$16 sps:$4 sm:$0xff]  }
  0xd2   : > { %2057 = vmatprep.subr.bf16.mxu0 %v3922_v39  ;;  %2221 = vmatprep.subr.bf16.mxu1 %v3925_v40  ;;  %v4012_v39 = vld [vmem:[#allocation3 + $0x6c4] ss:$16 sps:$4 sm:$0xff]   ;;  %v4015_v40 = vld [vmem:[#allocation3 + $0x6cc] ss:$16 sps:$4 sm:$0xff]  }
  0xd5   : > { %2058 = vmatpush1.bf16.msra.mxu0 %v3920_v41  ;;  %2222 = vmatpush1.bf16.msra.mxu1 %v3923_v42  ;;  %v4010_v41 = vld [vmem:[#allocation3 + $0x6c0] ss:$16 sps:$4 sm:$0xff]   ;;  %v4013_v42 = vld [vmem:[#allocation3 + $0x6c8] ss:$16 sps:$4 sm:$0xff]  }
  0xd6   : > { %2059 = vmatprep.subr.bf16.mxu0 %v3928_v43  ;;  %2223 = vmatprep.subr.bf16.mxu1 %v3931_v44  ;;  %v4018_v43 = vld [vmem:[#allocation3 + $0x6e4] ss:$16 sps:$4 sm:$0xff]   ;;  %v4021_v44 = vld [vmem:[#allocation3 + $0x6ec] ss:$16 sps:$4 sm:$0xff]  }
  0xd9   : > { %2060 = vmatpush1.bf16.msra.mxu0 %v3926_v45  ;;  %2224 = vmatpush1.bf16.msra.mxu1 %v3929_v46  ;;  %v4016_v45 = vld [vmem:[#allocation3 + $0x6e0] ss:$16 sps:$4 sm:$0xff]   ;;  %v4019_v46 = vld [vmem:[#allocation3 + $0x6e8] ss:$16 sps:$4 sm:$0xff]  }
  0xda   : > { %2061 = vmatprep.subr.bf16.mxu0 %v3934_v47  ;;  %2225 = vmatprep.subr.bf16.mxu1 %v3937_v48  ;;  %v4024_v47 = vld [vmem:[#allocation3 + $0x704] ss:$16 sps:$4 sm:$0xff]   ;;  %v4027_v48 = vld [vmem:[#allocation3 + $0x70c] ss:$16 sps:$4 sm:$0xff]  }
  0xdd   : > { %2062 = vmatpush1.bf16.msra.mxu0 %v3932_v49  ;;  %2226 = vmatpush1.bf16.msra.mxu1 %v3935_v50  ;;  %v4022_v49 = vld [vmem:[#allocation3 + $0x700] ss:$16 sps:$4 sm:$0xff]   ;;  %v4025_v50 = vld [vmem:[#allocation3 + $0x708] ss:$16 sps:$4 sm:$0xff]  }
  0xde   : > { %2063 = vmatprep.subr.bf16.mxu0 %v3940_v51  ;;  %2227 = vmatprep.subr.bf16.mxu1 %v3943_v52  ;;  %v4030_v51 = vld [vmem:[#allocation3 + $0x724] ss:$16 sps:$4 sm:$0xff]   ;;  %v4033_v52 = vld [vmem:[#allocation3 + $0x72c] ss:$16 sps:$4 sm:$0xff]  }
  0xe1   : > { %2064 = vmatpush1.bf16.msra.mxu0 %v3938_v53  ;;  %2228 = vmatpush1.bf16.msra.mxu1 %v3941_v54  ;;  %v4028_v53 = vld [vmem:[#allocation3 + $0x720] ss:$16 sps:$4 sm:$0xff]   ;;  %v4031_v54 = vld [vmem:[#allocation3 + $0x728] ss:$16 sps:$4 sm:$0xff]  }
  0xe2   : > { %2065 = vmatprep.subr.bf16.mxu0 %v3946_v55  ;;  %2229 = vmatprep.subr.bf16.mxu1 %v3949_v56  ;;  %v4036_v55 = vld [vmem:[#allocation3 + $0x744] ss:$16 sps:$4 sm:$0xff]   ;;  %v4039_v56 = vld [vmem:[#allocation3 + $0x74c] ss:$16 sps:$4 sm:$0xff]  }
  0xe5   : > { %2066 = vmatpush1.bf16.msra.mxu0 %v3944_v57  ;;  %2230 = vmatpush1.bf16.msra.mxu1 %v3947_v58  ;;  %v4034_v57 = vld [vmem:[#allocation3 + $0x740] ss:$16 sps:$4 sm:$0xff]   ;;  %v4037_v58 = vld [vmem:[#allocation3 + $0x748] ss:$16 sps:$4 sm:$0xff]  }
  0xe6   : > { %2067 = vmatprep.subr.bf16.mxu0 %v3952_v59  ;;  %2231 = vmatprep.subr.bf16.mxu1 %v3955_v60  ;;  %v4042_v59 = vld [vmem:[#allocation3 + $0x764] ss:$16 sps:$4 sm:$0xff]   ;;  %v4045_v60 = vld [vmem:[#allocation3 + $0x76c] ss:$16 sps:$4 sm:$0xff]  }
  0xe9   : > { %2068 = vmatpush1.bf16.msra.mxu0 %v3950_v61  ;;  %2232 = vmatpush1.bf16.msra.mxu1 %v3953_v62  ;;  %v4040_v61 = vld [vmem:[#allocation3 + $0x760] ss:$16 sps:$4 sm:$0xff]   ;;  %v4043_v62 = vld [vmem:[#allocation3 + $0x768] ss:$16 sps:$4 sm:$0xff]  }
  0xea   : > { %2069 = vmatprep.subr.bf16.mxu0 %v3958_v63  ;;  %2233 = vmatprep.subr.bf16.mxu1 %v3961_v0  ;;  %v4048_v63 = vld [vmem:[#allocation3 + $0x784] ss:$16 sps:$4 sm:$0xff]   ;;  %v4051_v0 = vld [vmem:[#allocation3 + $0x78c] ss:$16 sps:$4 sm:$0xff]  }
  0xed   : > { %2070 = vmatpush1.bf16.msra.mxu0 %v3956_v1  ;;  %2234 = vmatpush1.bf16.msra.mxu1 %v3959_v2  ;;  %v4046_v1 = vld [vmem:[#allocation3 + $0x780] ss:$16 sps:$4 sm:$0xff]   ;;  %v4049_v2 = vld [vmem:[#allocation3 + $0x788] ss:$16 sps:$4 sm:$0xff]  }
  0xee   : > { %2071 = vmatprep.subr.bf16.mxu0 %v3964_v3  ;;  %2235 = vmatprep.subr.bf16.mxu1 %v3967_v4  ;;  %v4054_v3 = vld [vmem:[#allocation3 + $0x7a4] ss:$16 sps:$4 sm:$0xff]   ;;  %v4057_v4 = vld [vmem:[#allocation3 + $0x7ac] ss:$16 sps:$4 sm:$0xff]  }
  0xf1   : > { %2072 = vmatpush1.bf16.msra.mxu0 %v3962_v5  ;;  %2236 = vmatpush1.bf16.msra.mxu1 %v3965_v6  ;;  %v4052_v5 = vld [vmem:[#allocation3 + $0x7a0] ss:$16 sps:$4 sm:$0xff]   ;;  %v4055_v6 = vld [vmem:[#allocation3 + $0x7a8] ss:$16 sps:$4 sm:$0xff]  }
  0xf2   : > { %2073 = vmatprep.subr.bf16.mxu0 %v3970_v7  ;;  %2237 = vmatprep.subr.bf16.mxu1 %v3973_v8  ;;  %v4060_v7 = vld [vmem:[#allocation3 + $0x7c4] ss:$16 sps:$4 sm:$0xff]   ;;  %v4063_v8 = vld [vmem:[#allocation3 + $0x7cc] ss:$16 sps:$4 sm:$0xff]  }
  0xf5   : > { %2074 = vmatpush1.bf16.msra.mxu0 %v3968_v9  ;;  %2238 = vmatpush1.bf16.msra.mxu1 %v3971_v10  ;;  %v4058_v9 = vld [vmem:[#allocation3 + $0x7c0] ss:$16 sps:$4 sm:$0xff]   ;;  %v4061_v10 = vld [vmem:[#allocation3 + $0x7c8] ss:$16 sps:$4 sm:$0xff]  }
  0xf6   : > { %2084 = vmatprep.subr.bf16.mxu0 %v3976_v11  ;;  %2248 = vmatprep.subr.bf16.mxu1 %v3979_v13  ;;  %v4066_v11 = vld [vmem:[#allocation3 + $0x7e4] ss:$16 sps:$4 sm:$0xff]   ;;  %v4064_v13 = vld [vmem:[#allocation3 + $0x7e0] ss:$16 sps:$4 sm:$0xff]  }
  0xf8   : > { %2076 = vmatmul.mubr.bf16.vlgmr.msra.gmra.mrb[0].mxu0 %v399_v17  ;;  %2240 = vmatmul.mubr.bf16.vlgmr.msra.gmra.mrb[0].mxu1 %v399_v17 }
  0xf9   : > { %2085 = vmatpush1.bf16.msra.mxu0 %v3974_v15  ;;  %2249 = vmatpush1.bf16.msra.mxu1 %v3977_v16  ;;  %v393_v15 = vld [vmem:[%s4455_s14 + $0x30] sm:$0xff]  ;;  %v4072_v16 = vld [vmem:[%s4808_s2 + $0x4] ss:$8 sps:$4 sm:$0xff]   ;;  %s3091_s14 = sshll.u32 %s376_s29, 4  ;;  %s3092_s14 = int_to_ptr.vmem [resolvable:$true] %s3091_s14 }
  0xfa   : > { %2086 = vmatprep.subr.bf16.mxu0 %v3982_v18  ;;  %2250 = vmatprep.subr.bf16.mxu1 %v3985_v19  ;;  %v401_v17 = vpack.c.bf16 %v393_v15, %v393_v15  ;;  %v4070_v18 = vld [vmem:[%s4808_s2] ss:$8 sps:$4 sm:$0xff]   ;;  %v4075_v19 = vld [vmem:[%s4808_s2 + $0x14] ss:$8 sps:$4 sm:$0xff]   ;;  %s4232_s30 = scalar_lea.vmem %s3092_s14, 128  ;;  %p4239_p2 = scmp.lt.s32.totalorder %s3092_s14, %s4237_s0 }
  0xfb   : > { %2116 = vmatprep.mubr.bf16.mxu0 %v402_v22  ;;  %2280 = vmatprep.mubr.bf16.mxu1 %v402_v22  ;;  %v4076_v22 = vld [vmem:[%s4808_s2 + $0x20] ss:$8 sps:$4 sm:$0xff]   ;;  %p4233_p6 = scmp.ne.s32.totalorder %s3092_s14, %s4232_s30  ;;  %p4240_p3 = scmp.lt.s32.totalorder %s4238_s28, %s4232_s30 }
  0xfd   : > { %2087 = vmatpush1.bf16.msra.mxu0 %v3980_v20  ;;  %2251 = vmatpush1.bf16.msra.mxu1 %v3983_v21  ;;  %v4073_v20 = vld [vmem:[%s4808_s2 + $0x10] ss:$8 sps:$4 sm:$0xff]   ;;  %v4078_v21 = vld [vmem:[%s4808_s2 + $0x24] ss:$8 sps:$4 sm:$0xff]   ;;  %p4234_p10 = pnand %p4233_p6, %p4829_p9  ;;  %p4241_p4 = por %p4240_p3, %p4239_p2 }
  0xfe   : > { %2088 = vmatprep.subr.bf16.mxu0 %v3988_v23  ;;  %2252 = vmatprep.subr.bf16.mxu1 %v3991_v24  ;;  %v4081_v23 = vld [vmem:[%s4808_s2 + $0x34] ss:$8 sps:$4 sm:$0xff]   ;;  %v4079_v24 = vld [vmem:[%s4808_s2 + $0x30] ss:$8 sps:$4 sm:$0xff]  }
  0xff   : > { %p4235_p12 = pneg %p4234_p10 }
 0x101   : > { %2089 = vmatpush1.bf16.msra.mxu0 %v3986_v25  ;;  %2253 = vmatpush1.bf16.msra.mxu1 %v3989_v26  ;;  %v4084_v25 = vld [vmem:[%s4808_s2 + $0x44] ss:$8 sps:$4 sm:$0xff]   ;;  %v4082_v26 = vld [vmem:[%s4808_s2 + $0x40] ss:$8 sps:$4 sm:$0xff]   ;;  %p4242_p7 = pnand %p4241_p4, %p4235_p12 }
 0x102   : > { %2090 = vmatprep.subr.bf16.mxu0 %v3994_v27  ;;  %2254 = vmatprep.subr.bf16.mxu1 %v3997_v28  ;;  %v4087_v27 = vld [vmem:[%s4808_s2 + $0x54] ss:$8 sps:$4 sm:$0xff]   ;;  %v4085_v28 = vld [vmem:[%s4808_s2 + $0x50] ss:$8 sps:$4 sm:$0xff]  }
 0x105   : > { %2091 = vmatpush1.bf16.msra.mxu0 %v3992_v29  ;;  %2255 = vmatpush1.bf16.msra.mxu1 %v3995_v30  ;;  %v4090_v29 = vld [vmem:[%s4808_s2 + $0x64] ss:$8 sps:$4 sm:$0xff]   ;;  %v4088_v30 = vld [vmem:[%s4808_s2 + $0x60] ss:$8 sps:$4 sm:$0xff]  }
 0x106   : > { %2092 = vmatprep.subr.bf16.mxu0 %v4000_v31  ;;  %2256 = vmatprep.subr.bf16.mxu1 %v4003_v32  ;;  %v4093_v31 = vld [vmem:[%s4808_s2 + $0x74] ss:$8 sps:$4 sm:$0xff]   ;;  %v4091_v32 = vld [vmem:[%s4808_s2 + $0x70] ss:$8 sps:$4 sm:$0xff]  }
 0x109   : > { %2093 = vmatpush1.bf16.msra.mxu0 %v3998_v33  ;;  %2257 = vmatpush1.bf16.msra.mxu1 %v4001_v34  ;;  %v4096_v33 = vld [vmem:[%s4808_s2 + $0x84] ss:$8 sps:$4 sm:$0xff]   ;;  %v4094_v34 = vld [vmem:[%s4808_s2 + $0x80] ss:$8 sps:$4 sm:$0xff]  }
 0x10a   : > { %2094 = vmatprep.subr.bf16.mxu0 %v4006_v35  ;;  %2258 = vmatprep.subr.bf16.mxu1 %v4009_v36  ;;  %v4099_v35 = vld [vmem:[%s4808_s2 + $0x94] ss:$8 sps:$4 sm:$0xff]   ;;  %v4097_v36 = vld [vmem:[%s4808_s2 + $0x90] ss:$8 sps:$4 sm:$0xff]  }
 0x10d   : > { %2095 = vmatpush1.bf16.msra.mxu0 %v4004_v37  ;;  %2259 = vmatpush1.bf16.msra.mxu1 %v4007_v38  ;;  %v4102_v37 = vld [vmem:[%s4808_s2 + $0xa4] ss:$8 sps:$4 sm:$0xff]   ;;  %v4100_v38 = vld [vmem:[%s4808_s2 + $0xa0] ss:$8 sps:$4 sm:$0xff]  }
 0x10e   : > { %2096 = vmatprep.subr.bf16.mxu0 %v4012_v39  ;;  %2260 = vmatprep.subr.bf16.mxu1 %v4015_v40  ;;  %v4105_v39 = vld [vmem:[%s4808_s2 + $0xb4] ss:$8 sps:$4 sm:$0xff]   ;;  %v4103_v40 = vld [vmem:[%s4808_s2 + $0xb0] ss:$8 sps:$4 sm:$0xff]  }
 0x111   : > { %2097 = vmatpush1.bf16.msra.mxu0 %v4010_v41  ;;  %2261 = vmatpush1.bf16.msra.mxu1 %v4013_v42  ;;  %v4108_v41 = vld [vmem:[%s4808_s2 + $0xc4] ss:$8 sps:$4 sm:$0xff]   ;;  %v4106_v42 = vld [vmem:[%s4808_s2 + $0xc0] ss:$8 sps:$4 sm:$0xff]  }
 0x112   : > { %2098 = vmatprep.subr.bf16.mxu0 %v4018_v43  ;;  %2262 = vmatprep.subr.bf16.mxu1 %v4021_v44  ;;  %v4111_v43 = vld [vmem:[%s4808_s2 + $0xd4] ss:$8 sps:$4 sm:$0xff]   ;;  %v4109_v44 = vld [vmem:[%s4808_s2 + $0xd0] ss:$8 sps:$4 sm:$0xff]  }
 0x115   : > { %2099 = vmatpush1.bf16.msra.mxu0 %v4016_v45  ;;  %2263 = vmatpush1.bf16.msra.mxu1 %v4019_v46  ;;  %v4114_v45 = vld [vmem:[%s4808_s2 + $0xe4] ss:$8 sps:$4 sm:$0xff]   ;;  %v4112_v46 = vld [vmem:[%s4808_s2 + $0xe0] ss:$8 sps:$4 sm:$0xff]  }
 0x116   : > { %2100 = vmatprep.subr.bf16.mxu0 %v4024_v47  ;;  %2264 = vmatprep.subr.bf16.mxu1 %v4027_v48  ;;  %v4117_v47 = vld [vmem:[%s4808_s2 + $0xf4] ss:$8 sps:$4 sm:$0xff]   ;;  %v4115_v48 = vld [vmem:[%s4808_s2 + $0xf0] ss:$8 sps:$4 sm:$0xff]  }
 0x119   : > { %2101 = vmatpush1.bf16.msra.mxu0 %v4022_v49  ;;  %2265 = vmatpush1.bf16.msra.mxu1 %v4025_v50  ;;  %v4120_v49 = vld [vmem:[%s4808_s2 + $0x104] ss:$8 sps:$4 sm:$0xff]  }
 0x11a   : > { %2102 = vmatprep.subr.bf16.mxu0 %v4030_v51  ;;  %2266 = vmatprep.subr.bf16.mxu1 %v4033_v52  ;;  %v4166_v50 = vld [vmem:[%s4809_s3 + $0x40] sm:$0xff]   ;;  %v4168_v52 = vld [vmem:[%s4809_s3 + $0x48] sm:$0xff]  }
 0x11b   : > { %v4167_v51 = vld [vmem:[%s4809_s3] sm:$0xff]  }
 0x11d   : > { %2103 = vmatpush1.bf16.msra.mxu0 %v4028_v53  ;;  %2267 = vmatpush1.bf16.msra.mxu1 %v4031_v54  ;;  %v4169_v53 = vld [vmem:[%s4809_s3 + $0x8] sm:$0xff]   ;;  %v4170_v54 = vld [vmem:[%s4809_s3 + $0x50] sm:$0xff]  }
 0x11e   : > { %2104 = vmatprep.subr.bf16.mxu0 %v4036_v55  ;;  %2268 = vmatprep.subr.bf16.mxu1 %v4039_v56  ;;  %v4171_v55 = vld [vmem:[%s4809_s3 + $0x10] sm:$0xff]   ;;  %v4172_v56 = vld [vmem:[%s4809_s3 + $0x58] sm:$0xff]  }
 0x121   : > { %2105 = vmatpush1.bf16.msra.mxu0 %v4034_v57  ;;  %2269 = vmatpush1.bf16.msra.mxu1 %v4037_v58  ;;  %v4173_v57 = vld [vmem:[%s4809_s3 + $0x18] sm:$0xff]   ;;  %v661_v58 = vlaneseq }
 0x122   : > { %2106 = vmatprep.subr.bf16.mxu0 %v4042_v59  ;;  %2270 = vmatprep.subr.bf16.mxu1 %v4045_v60 }
 0x123   : > { %v4588_v59 = vshrl.u32 %v661_v58, 7  ;;  %v4176_v58 = vld [vmem:[%s4809_s3 + $0x68] sm:$0xff]  }
 0x125   : > { %2107 = vmatpush1.bf16.msra.mxu0 %v4040_v61  ;;  %2271 = vmatpush1.bf16.msra.mxu1 %v4043_v62  ;;  %v663_v60 = vsub.s32 0, %v4588_v59  ;;  %v4594_v61 = vld [vmem:[%s4810_s4] sm:$0xf]  ;;  %v667_v62 = vsub.s32 1, %v4588_v59 }
 0x126   : > { %2108 = vmatprep.subr.bf16.mxu0 %v4048_v63  ;;  %2272 = vmatprep.subr.bf16.mxu1 %v4051_v0  ;;  %v675_v63 = vsub.s32 3, %v4588_v59 }
 0x127   : > { %v664_v0 = vrot.slane %v4594_v61, %v663_v60 }
 0x129   : > { %2109 = vmatpush1.bf16.msra.mxu0 %v4046_v1  ;;  %2273 = vmatpush1.bf16.msra.mxu1 %v4049_v2  ;;  %v668_v1 = vrot.slane %v4594_v61, %v667_v62  ;;  %v676_v2 = vrot.slane %v4594_v61, %v675_v63  ;;  %v4178_v63 = vld [vmem:[%s4809_s3 + $0x70] sm:$0xff]  }
 0x12a   : > { %2110 = vmatprep.subr.bf16.mxu0 %v4054_v3  ;;  %2274 = vmatprep.subr.bf16.mxu1 %v4057_v4 }
 0x12d   : > { %2111 = vmatpush1.bf16.msra.mxu0 %v4052_v5  ;;  %2275 = vmatpush1.bf16.msra.mxu1 %v4055_v6 }
 0x12e   : > { %2112 = vmatprep.subr.bf16.mxu0 %v4060_v7  ;;  %2276 = vmatprep.subr.bf16.mxu1 %v4063_v8 }
 0x131   : > { %2113 = vmatpush1.bf16.msra.mxu0 %v4058_v9  ;;  %2277 = vmatpush1.bf16.msra.mxu1 %v4061_v10 }
 0x132   : > { %2114 = vmatprep.subr.bf16.mxu0 %v4066_v11  ;;  %2278 = vmatprep.subr.bf16.mxu1 %v4069_v12 }
 0x135   : > { %2115 = vmatpush1.bf16.msra.mxu0 %v4064_v13  ;;  %2279 = vmatpush1.bf16.msra.mxu1 %v4067_v14 }
 0x136   : > { %2693 = vmatprep.subr.bf16.mxu0 %v4072_v16  ;;  %3547 = vmatprep.subr.bf16.mxu1 %v4166_v50  ;;  %v4162_v50 = vld [vmem:[%s4808_s2 + $0x1e4] ss:$8 sps:$4 sm:$0xff]  }
 0x138   : > { %2117 = vmatmul.mubr.bf16.vlgmr.msra.gmra.mrb[0].mxu0 %v401_v17  ;;  %2281 = vmatmul.mubr.bf16.vlgmr.msra.gmra.mrb[0].mxu1 %v401_v17 }
 0x139   : > { %2694 = vmatpush1.bf16.msra.mxu0 %v4070_v18  ;;  %3548 = vmatpush3.bf16.msra.mxu1 %v4167_v51  ;;  %v4118_v18 = vld [vmem:[%s4808_s2 + $0x100] ss:$8 sps:$4 sm:$0xff]  }
 0x13a   : > { %2695 = vmatprep.subr.bf16.mxu0 %v4075_v19  ;;  %3549 = vmatprep.subr.bf16.mxu1 %v4168_v52  ;;  %v4160_v51 = vld [vmem:[%s4808_s2 + $0x1e0] ss:$8 sps:$4 sm:$0xff]   ;;  %v4165_v52 = vld [vmem:[%s4808_s2 + $0x1f4] ss:$8 sps:$4 sm:$0xff]  }
 0x13d   : > { %2696 = vmatpush1.bf16.msra.mxu0 %v4073_v20  ;;  %3550 = vmatpush3.bf16.msra.mxu1 %v4169_v53  ;;  %v4123_v20 = vld [vmem:[%s4808_s2 + $0x114] ss:$8 sps:$4 sm:$0xff]   ;;  %v4163_v53 = vld [vmem:[%s4808_s2 + $0x1f0] ss:$8 sps:$4 sm:$0xff]  }
 0x13e   : > { %2697 = vmatprep.subr.bf16.mxu0 %v4078_v21  ;;  %3551 = vmatprep.subr.bf16.mxu1 %v4170_v54 }
 0x141   : > { %2698 = vmatpush1.bf16.msra.mxu0 %v4076_v22  ;;  %3552 = vmatpush3.bf16.msra.mxu1 %v4171_v55  ;;  %v4121_v22 = vld [vmem:[%s4808_s2 + $0x110] ss:$8 sps:$4 sm:$0xff]  }
 0x142   : > { %2699 = vmatprep.subr.bf16.mxu0 %v4081_v23  ;;  %3553 = vmatprep.subr.bf16.mxu1 %v4172_v56  ;;  %v4126_v23 = vld [vmem:[%s4808_s2 + $0x124] ss:$8 sps:$4 sm:$0xff]  }
 0x143   : > { %v4174_v56 = vld [vmem:[%s4809_s3 + $0x60] sm:$0xff]  }
 0x145   : > { %2700 = vmatpush1.bf16.msra.mxu0 %v4079_v24  ;;  %3554 = vmatpush3.bf16.msra.mxu1 %v4173_v57  ;;  %v4124_v24 = vld [vmem:[%s4808_s2 + $0x120] ss:$8 sps:$4 sm:$0xff]  }
 0x146   : > { %2701 = vmatprep.subr.bf16.mxu0 %v4084_v25  ;;  %v4129_v25 = vld [vmem:[%s4808_s2 + $0x134] ss:$8 sps:$4 sm:$0xff]   ;;  %v4175_v57 = vld [vmem:[%s4809_s3 + $0x20] sm:$0xff]   ;;  %3555 = vmatprep.subr.bf16.mxu1 %v4174_v56 }
 0x149   : > { %2702 = vmatpush1.bf16.msra.mxu0 %v4082_v26  ;;  %v4127_v26 = vld [vmem:[%s4808_s2 + $0x130] ss:$8 sps:$4 sm:$0xff]   ;;  %3556 = vmatpush3.bf16.msra.mxu1 %v4175_v57 }
 0x14a   : > { %2703 = vmatprep.subr.bf16.mxu0 %v4087_v27  ;;  %v4132_v27 = vld [vmem:[%s4808_s2 + $0x144] ss:$8 sps:$4 sm:$0xff]   ;;  %3557 = vmatprep.subr.bf16.mxu1 %v4176_v58 }
 0x14d   : > { %2704 = vmatpush1.bf16.msra.mxu0 %v4085_v28  ;;  %v4130_v28 = vld [vmem:[%s4808_s2 + $0x140] ss:$8 sps:$4 sm:$0xff]  }
 0x14e   : > { %2705 = vmatprep.subr.bf16.mxu0 %v4090_v29  ;;  %v4135_v29 = vld [vmem:[%s4808_s2 + $0x154] ss:$8 sps:$4 sm:$0xff]  }
 0x151   : > { %2706 = vmatpush1.bf16.msra.mxu0 %v4088_v30  ;;  %v4133_v30 = vld [vmem:[%s4808_s2 + $0x150] ss:$8 sps:$4 sm:$0xff]  }
 0x152   : > { %2707 = vmatprep.subr.bf16.mxu0 %v4093_v31  ;;  %v4138_v31 = vld [vmem:[%s4808_s2 + $0x164] ss:$8 sps:$4 sm:$0xff]  }
 0x155   : > { %2708 = vmatpush1.bf16.msra.mxu0 %v4091_v32  ;;  %v4136_v32 = vld [vmem:[%s4808_s2 + $0x160] ss:$8 sps:$4 sm:$0xff]  }
 0x156   : > { %2709 = vmatprep.subr.bf16.mxu0 %v4096_v33  ;;  %v4141_v33 = vld [vmem:[%s4808_s2 + $0x174] ss:$8 sps:$4 sm:$0xff]  }
 0x159   : > { %2710 = vmatpush1.bf16.msra.mxu0 %v4094_v34  ;;  %v4139_v34 = vld [vmem:[%s4808_s2 + $0x170] ss:$8 sps:$4 sm:$0xff]  }
 0x15a   : > { %2711 = vmatprep.subr.bf16.mxu0 %v4099_v35  ;;  %v4144_v35 = vld [vmem:[%s4808_s2 + $0x184] ss:$8 sps:$4 sm:$0xff]  }
 0x15d   : > { %2712 = vmatpush1.bf16.msra.mxu0 %v4097_v36  ;;  %v4142_v36 = vld [vmem:[%s4808_s2 + $0x180] ss:$8 sps:$4 sm:$0xff]  }
 0x15e   : > { %2713 = vmatprep.subr.bf16.mxu0 %v4102_v37  ;;  %v4147_v37 = vld [vmem:[%s4808_s2 + $0x194] ss:$8 sps:$4 sm:$0xff]  }
 0x161   : > { %2714 = vmatpush1.bf16.msra.mxu0 %v4100_v38  ;;  %v4145_v38 = vld [vmem:[%s4808_s2 + $0x190] ss:$8 sps:$4 sm:$0xff]  }
 0x162   : > { %2715 = vmatprep.subr.bf16.mxu0 %v4105_v39  ;;  %v4150_v39 = vld [vmem:[%s4808_s2 + $0x1a4] ss:$8 sps:$4 sm:$0xff]  }
 0x165   : > { %2716 = vmatpush1.bf16.msra.mxu0 %v4103_v40  ;;  %v671_v40 = vsub.s32 2, %v4588_v59  ;;  %v4183_v59 = vld [vmem:[%s4813_s7 + $0x8] sm:$0xff]  }
 0x166   : > { %2717 = vmatprep.subr.bf16.mxu0 %v4108_v41  ;;  %v4148_v41 = vld [vmem:[%s4808_s2 + $0x1a0] ss:$8 sps:$4 sm:$0xff]  }
 0x169   : > { %2718 = vmatpush1.bf16.msra.mxu0 %v4106_v42  ;;  %v4153_v42 = vld [vmem:[%s4808_s2 + $0x1b4] ss:$8 sps:$4 sm:$0xff]  }
 0x16a   : > { %2719 = vmatprep.subr.bf16.mxu0 %v4111_v43  ;;  %v672_v43 = vrot.slane %v4594_v61, %v671_v40  ;;  %v4177_v61 = vld [vmem:[%s4809_s3 + $0x28] sm:$0xff]  }
 0x16b   : > { %3558 = vmatpush3.bf16.msra.mxu1 %v4177_v61 }
 0x16c   : > { %3559 = vmatprep.subr.bf16.mxu1 %v4178_v63 }
 0x16d   : > { %2720 = vmatpush1.bf16.msra.mxu0 %v4109_v44  ;;  %v4151_v44 = vld [vmem:[%s4808_s2 + $0x1b0] ss:$8 sps:$4 sm:$0xff]  }
 0x16e   : > { %2721 = vmatprep.subr.bf16.mxu0 %v4114_v45  ;;  %v4156_v45 = vld [vmem:[%s4808_s2 + $0x1c4] ss:$8 sps:$4 sm:$0xff]  }
 0x171   : > { %2722 = vmatpush1.bf16.msra.mxu0 %v4112_v46 }
 0x172   : > { %2723 = vmatprep.subr.bf16.mxu0 %v4117_v47  ;;  %v4154_v47 = vld [vmem:[%s4808_s2 + $0x1c0] ss:$8 sps:$4 sm:$0xff]  }
 0x175   : > { %2724 = vmatpush1.bf16.msra.mxu0 %v4115_v48  ;;  %v4159_v48 = vld [vmem:[%s4808_s2 + $0x1d4] ss:$8 sps:$4 sm:$0xff]  }
 0x176   : > { %2734 = vmatprep.subr.bf16.mxu0 %v4120_v49  ;;  %v4157_v49 = vld [vmem:[%s4808_s2 + $0x1d0] ss:$8 sps:$4 sm:$0xff]  }
 0x20b   : > { %v2118_v3 = vpop.f32.mrb[0].mxu0  ;;  %v4605_v4 = vpop.f32.mrb[0].mxu1 }
 0x20c   : > { %v3598_v5 = vadd.f32 %v2118_v3, %v664_v0  ;;  %v2120_v6 = vpop.f32.mrb[1].mxu0  ;;  %v2284_v7 = vpop.f32.mrb[1].mxu1  ;;  %v3600_v46 = vadd.f32 %v4605_v4, %v672_v43  ;;  %v4179_v0 = vld [vmem:[%s4809_s3 + $0x30] sm:$0xff]   ;;  %v4303_v3 = vmov 0.0   ;;  %v2361_v4 = vld [vmem:[%s4811_s5] sm:$0x3] }
 0x20d   : > { %v3599_v8 = vadd.f32 %v2120_v6, %v668_v1  ;;  %v3601_v9 = vadd.f32 %v2284_v7, %v676_v2  ;;  %v2122_v10 = vpop.f32.mrb[2].mxu0  ;;  %v2286_v11 = vpop.f32.mrb[2].mxu1  ;;  %3560 = vmatpush3.bf16.msra.mxu1 %v4179_v0  ;;  %v4180_v1 = vld [vmem:[%s4809_s3 + $0x78] sm:$0xff]   ;;  %v2370_v6 = vrot.slane %v2361_v4, %v667_v62 }
 0x20e   : > { %v2123_v12 = vpop.f32.mrb[3].mxu0  ;;  %v2287_v13 = vpop.f32.mrb[3].mxu1  ;;  %4190 = vtanh.f32 %v3598_v5  ;;  %v4181_v2 = vld [vmem:[%s4809_s3 + $0x38] sm:$0xff]   ;;  %3561 = vmatprep.subr.bf16.mxu1 %v4180_v1  ;;  %v2366_v5 = vrot.slane %v2361_v4, %v663_v60  ;;  %v4184_v60 = vld [vmem:[%s4813_s7 + $0x10] sm:$0xff]  }
 0x20f   : > { %4192 = vtanh.f32 %v3599_v8  ;;  %v4185_v62 = vld [vmem:[%s4813_s7 + $0x18] sm:$0xff]  }
 0x210   : > { %4194 = vtanh.f32 %v3601_v9 }
 0x211   : > { %4196 = vtanh.f32 %v3600_v46  ;;  %3562 = vmatpush3.bf16.msra.mxu1 %v4181_v2 }
 0x212   : > { %3578 = vmatprep.subr.bf16.mxu1 %v4303_v3 }
 0x218   : > { %v4191_v14 = vpop.eup %4190 }
 0x219   : > { %v4193_v15 = vpop.eup %4192  ;;  %v2293_v19 = vpack.c.bf16 %v4191_v14, %v4191_v14 }
 0x21a   : > { %v4195_v16 = vpop.eup %4194  ;;  %v2294_v17 = vpack.c.bf16 %v4193_v15, %v4193_v15 }
 0x21b   : > { %v2296_v21 = vpack.c.bf16 %v4195_v16, %v4195_v16  ;;  %v4197_v54 = vpop.eup %4196  ;;  %v4182_v16 = vld [vmem:[%s4813_s7] sm:$0xff]  }
 0x21c   : > { %2725 = vmatprep.mubr.bf16.mxu0 %v2294_v17  ;;  %v2295_v55 = vpack.c.bf16 %v4197_v54, %v4197_v54 }
 0x21d   : > { %2726 = vmatmul.mubr.bf16.vlgmr.msra.gmra.mrb[4].mxu0 %v2293_v19  ;;  %v4187_v19 = vld [vmem:[%s4813_s7 + $0x28] sm:$0xff]  }
 0x21e   : > { %2735 = vmatpush1.bf16.msra.mxu0 %v4118_v18  ;;  %2766 = vmatprep.mubr.bf16.mxu0 %v2296_v21  ;;  %v4186_v18 = vld [vmem:[%s4813_s7 + $0x20] sm:$0xff]   ;;  %v4189_v21 = vld [vmem:[%s4813_s7 + $0x38] sm:$0xff]  }
 0x21f   : > { %2736 = vmatprep.subr.bf16.mxu0 %v4123_v20  ;;  %v4188_v20 = vld [vmem:[%s4813_s7 + $0x30] sm:$0xff]  }
 0x222   : > { %2737 = vmatpush1.bf16.msra.mxu0 %v4121_v22 }
 0x223   : > { %2738 = vmatprep.subr.bf16.mxu0 %v4126_v23  ;;  %v3516_v23 = vld [vmem:[%s4812_s6] ss:$0 sm:$0xff] }
 0x226   : > { %2739 = vmatpush1.bf16.msra.mxu0 %v4124_v24 }
 0x227   : > { %2740 = vmatprep.subr.bf16.mxu0 %v4129_v25 }
 0x22a   : > { %2741 = vmatpush1.bf16.msra.mxu0 %v4127_v26 }
 0x22b   : > { %2742 = vmatprep.subr.bf16.mxu0 %v4132_v27 }
 0x22e   : > { %2743 = vmatpush1.bf16.msra.mxu0 %v4130_v28 }
 0x22f   : > { %2744 = vmatprep.subr.bf16.mxu0 %v4135_v29 }
 0x232   : > { %2745 = vmatpush1.bf16.msra.mxu0 %v4133_v30 }
 0x233   : > { %2746 = vmatprep.subr.bf16.mxu0 %v4138_v31 }
 0x236   : > { %2747 = vmatpush1.bf16.msra.mxu0 %v4136_v32 }
 0x237   : > { %2748 = vmatprep.subr.bf16.mxu0 %v4141_v33 }
 0x23a   : > { %2749 = vmatpush1.bf16.msra.mxu0 %v4139_v34 }
 0x23b   : > { %2750 = vmatprep.subr.bf16.mxu0 %v4144_v35 }
 0x23e   : > { %2751 = vmatpush1.bf16.msra.mxu0 %v4142_v36 }
 0x23f   : > { %2752 = vmatprep.subr.bf16.mxu0 %v4147_v37 }
 0x242   : > { %2753 = vmatpush1.bf16.msra.mxu0 %v4145_v38 }
 0x243   : > { %2754 = vmatprep.subr.bf16.mxu0 %v4150_v39 }
 0x246   : > { %2755 = vmatpush1.bf16.msra.mxu0 %v4148_v41 }
 0x247   : > { %2756 = vmatprep.subr.bf16.mxu0 %v4153_v42 }
 0x24a   : > { %2757 = vmatpush1.bf16.msra.mxu0 %v4151_v44 }
 0x24b   : > { %2758 = vmatprep.subr.bf16.mxu0 %v4156_v45 }
 0x24e   : > { %2759 = vmatpush1.bf16.msra.mxu0 %v4154_v47 }
 0x24f   : > { %2760 = vmatprep.subr.bf16.mxu0 %v4159_v48 }
 0x252   : > { %2761 = vmatpush1.bf16.msra.mxu0 %v4157_v49 }
 0x253   : > { %2762 = vmatprep.subr.bf16.mxu0 %v4162_v50 }
 0x256   : > { %2763 = vmatpush1.bf16.msra.mxu0 %v4160_v51 }
 0x257   : > { %2764 = vmatprep.subr.bf16.mxu0 %v4165_v52 }
 0x25a   : > { %2765 = vmatpush1.bf16.msra.mxu0 %v4163_v53 }
 0x25d   : > { %2767 = vmatmul.mubr.bf16.vlgmr.msra.gmra.mrb[4].mxu0 %v2295_v55 }
 0x330   : > { %v2768_v7 = vpop.f32.mrb[4].mxu0 }
 0x331   : > { %v3602_v8 = vadd.f32 %v2768_v7, %v2366_v5  ;;  %v2770_v9 = vpop.f32.mrb[5].mxu0 }
 0x332   : > { %v3603_v10 = vadd.f32 %v2770_v9, %v2370_v6  ;;  %v2772_v11 = vpop.f32.mrb[6].mxu0 }
 0x333   : > { %4198 = vtanh.f32 %v3602_v8  ;;  %v2773_v12 = vpop.f32.mrb[7].mxu0 }
 0x334   : > { %4200 = vtanh.f32 %v3603_v10 }
 0x33d   : > { %v4199_v13 = vpop.eup %4198 }
 0x33e   : > { %v4201_v14 = vpop.eup %4200  ;;  %v2777_v17 = vpack.c.bf16 %v4199_v13, %v4199_v13 }
 0x33f   : > { %v2778_v15 = vpack.c.bf16 %v4201_v14, %v4201_v14 }
 0x341   : > { %2946 = vmatprep.mubr.bf16.mxu1 %v2778_v15 }
 0x342   : > { %2947 = vmatmul.mubr.bf16.vlgmr.msra.gmra.mrb[4].mxu1 %v2777_v17 }
 0x343   : > { %3579 = vmatpush3.bf16.msra.mxu1 %v4182_v16  ;;  %3594 = vmatprep.mubr.msk.bf16.mxu1 %vm4304_vm0, %v4303_v3 }
 0x344   : > { %3580 = vmatprep.subr.bf16.mxu1 %v4303_v3 }
 0x347   : > { %3581 = vmatpush3.bf16.msra.mxu1 %v4183_v59 }
 0x348   : > { %3582 = vmatprep.subr.bf16.mxu1 %v4303_v3 }
 0x34b   : > { %3583 = vmatpush3.bf16.msra.mxu1 %v4184_v60 }
 0x34c   : > { %3584 = vmatprep.subr.bf16.mxu1 %v4303_v3 }
 0x34f   : > { %3585 = vmatpush3.bf16.msra.mxu1 %v4185_v62 }
 0x350   : > { %3586 = vmatprep.subr.bf16.mxu1 %v4303_v3 }
 0x353   : > { %3587 = vmatpush3.bf16.msra.mxu1 %v4186_v18 }
 0x354   : > { %3588 = vmatprep.subr.bf16.mxu1 %v4303_v3 }
 0x357   : > { %3589 = vmatpush3.bf16.msra.mxu1 %v4187_v19 }
 0x358   : > { %3590 = vmatprep.subr.bf16.mxu1 %v4303_v3 }
 0x35b   : > { %3591 = vmatpush3.bf16.msra.mxu1 %v4188_v20 }
 0x35c   : > { %3592 = vmatprep.subr.bf16.mxu1 %v4303_v3 }
 0x35f   : > { %3593 = vmatpush3.bf16.msra.mxu1 %v4189_v21 }
 0x415   : > { %v3563_v22 = vpop.f32.mrb[4].mxu1 }
 0x416   : > { %v3564_v24 = vpop.f32.mrb[5].mxu1 }
 0x417   : > { %v3565_v25 = vadd.f32 %v3564_v24, %v3563_v22  ;;  %v3566_v26 = vpop.f32.mrb[6].mxu1 }
 0x418   : > { %v3567_v27 = vpop.f32.mrb[7].mxu1 }
 0x419   : > { %v2949_v28 = vadd.f32 %v3565_v25, %v3516_v23 }
 0x41b   : > { %4202 = vtanh.f32 %v2949_v28 }
 0x425   : > { %v4203_v29 = vpop.eup %4202 }
 0x426   : > { %v2955_v30 = vpack.c.bf16 %v4203_v29, %v4203_v29  ;;  %2956 = vst [vmem:[%s376_s29] sm:$0xff] %v4203_v29 }
 0x428   : > { %3595 = vmatmul.mubr.bf16.vlgmr.msra.gmra.mrb[8].mxu1 %v2955_v30 }
 0x429   : > { %4245 = shalt.err (!%p4242_p7)
}
 0x42a   : > { %s4246_s8 = scalar_lea.hbm %s4766_s22, 128  ;;  %s4250_s12 = scalar_lea.hbm %s4816_s10, 384 }
 0x42b   : > { %p4247_p8 = scmp.ne.s32.totalorder %s4766_s22, %s4246_s8  ;;  %p4251_p1 = scmp.lt.u32.totalorder %s4766_s22, %s4816_s10 }
 0x42c   : > { %p4252_p0 = scmp.lt.u32.totalorder %s4250_s12, %s4246_s8  ;;  %p4254_p6 = scmp.lt.u32.totalorder %s4246_s8, %s4766_s22 }
 0x42d   : > { %p4248_p11 = pnand %p4247_p8, %p4829_p9 }
 0x42e   : > { %p4253_p5 = por %p4252_p0, %p4251_p1 }
 0x42f   : > { %p4249_p13 = pneg %p4248_p11 }
 0x430   : > { %p4255_p10 = por %p4254_p6, %p4253_p5 }
 0x432   : > { %p4256_p12 = pnand %p4255_p10, %p4249_p13 }
 0x434   : > { %4259 = shalt.err (!%p4256_p12)
}
 0x435   : > { %3636 = dma.vmem_to_hbm [thread:$0]  (%p4829_p9), %s3092_s14, 128, %s4766_s22, %s3075_s27   ;;  %v3533_v31 = vld [vmem:[#allocation2] ss:$0 sm:$0xff]  ;;  %vm3068_vm1 = vcmask 7168  }
 0x436   : > { %s3195_s21 = sshll.u32 %s4449_s26, 3 }
 0x437   : > { %s385_s28 = scalar_lea.vmem %s4815_s9, %s3195_s21 }
 0x4fb   : > { %v3062_v32 = vpop.f32.mrb[8].mxu1 }
 0x4fc   : > { %v3063_v33 = vadd.f32 %v3533_v31, %v3062_v32  ;;  %v3596_v34 = vpop.f32.mrb[9].mxu1 }
 0x4fd   : > { %v3065_v35 = vpop.f32.mrb[10].mxu1 }
 0x4fe   : > { %3069 = vst.msk [vmem:[%s385_s28] sm:$0xff] %vm3068_vm1, %v3063_v33  ;;  %v3597_v36 = vpop.f32.mrb[11].mxu1 }
 0x4ff PF: > { %p3648_p2 = scmp.ge.s32.totalorder %s4298_s18, 2  ;;  %s3110_s24 = sand.u32 1, %s4286_s15  }
 0x500   : > { %p4830_p9 = scmp.ne.s32.totalorder %s4822_s25, 0  ;;  %s3111_s26 = scalar_lea.sflag [#allocation5], %s3110_s24 }
 0x502   : > { %p3643_p3 = pnand %p3648_p2, %p4830_p9 }
 0x504   : > { %4281 = dma.done.wait (!%p3643_p3), %s3111_s26, 128  }
 0x505   : > { %4283 = vsyncadd (!%p3643_p3), %s3111_s26, 4294967168  ;;  %p24_p4 = scmp.ge.s32.totalorder %s4389_s20, 5   ;;  %s4831_s15 = smov %s4290_s16 }
 0x506   : > { %s4832_s16 = smov %s4294_s17  ;;  %s4833_s17 = smov %s4400_s23 }
 0x507   : > { %s4834_s18 = smov %s4389_s20  ;;  %26 = sbr.rel (!%p24_p4) target bundleno = 7 (0x7), region = 108 }
 0x50e   :  { %3116 = vsyncpa [#allocation4], 1 }
 0x50f   :  { %3118 = vsyncpa [#allocation4 + $0x1], 1 }
 0x510   :  { %3119 = vsyncpa [#allocation5], 1 }
 0x511   :  { %3121 = vsyncpa [#allocation5 + $0x1], 1 }

</bundles_post_ra>
